<compile_context>
chip_gen: v7x
topology: tpu7x:2x2x1
jax: 0.10.0
libtpu: 0.0.40
codegen_flags: <defaults>
</compile_context>

<pallas_src>
import math
import numpy as np
import jax
import jax.numpy as jnp
from jax import lax
from jax.experimental import pallas as pl
from jax.experimental.pallas import tpu as pltpu

# ----------------------------- problem sizes --------------------------------
N = 16                      # nodes per graph (single ntype, single etype)
IN_DIM = 32
OUT_DIM = 32
N_HEADS = 4
D_K = OUT_DIM // N_HEADS
SQRT_DK = math.sqrt(D_K)
GB = 4                      # graphs per grid step -> GB*OUT_DIM = 128 output lanes
HN = N_HEADS * N            # 64 stacked (head, dst) rows for the fused head math


# ------------------------------ Pallas kernel -------------------------------
def hgt_kernel(x_ref, w_ref, hm_ref, ra_ref, aew_ref, out_ref):
    """One grid step processes GB graphs.

    x_ref   : (GB*N, IN_DIM+1)   node feats + trailing ones column (bias fold)
    w_ref   : (IN_DIM+1, 3*OUT)  fused [Wk | Wq/sqrt(dk) | Wv.relation_msg] + bias row
    hm_ref  : (H*N, OUT)         block-diagonal head mask (1 iff lane-head == row-head)
    ra_ref  : (H*N, OUT)         relation_att/sqrt(dk), block-diagonal, repeated per dst
    aew_ref : (GB, 2, N, N)      [additive mask (0 / -1e30), edge weight] per graph
    out_ref : (1, N, GB*OUT)     GB graphs packed lane-dense (single 128-lane store)
    """
    # One fused MXU pass: K/Q/V projections for all GB graphs, bias included.
    kqv = jnp.dot(x_ref[...], w_ref[...], preferred_element_type=jnp.float32)
    hm = hm_ref[...]
    ra = ra_ref[...]

    graph_outs = []
    for g in range(GB):                              # static, unrolled
        rows = kqv[g * N:(g + 1) * N, :]             # (N, 3*OUT), sublane-aligned
        k = rows[:, 0:OUT_DIM]                       # (N, OUT)
        q = rows[:, OUT_DIM:2 * OUT_DIM]             # already scaled by 1/sqrt(d_k)
        v = rows[:, 2 * OUT_DIM:3 * OUT_DIM]         # already relation_msg-folded

        mask_add = aew_ref[g, 0]                     # (N, N): 0 on edge, -1e30 off
        ew = aew_ref[g, 1]                           # (N, N): per-edge scalar weight

        # All heads' q stacked block-diagonally: (H*N, OUT).
        q_bd = jnp.concatenate([q] * N_HEADS, axis=0) * hm
        # qk[h*N+d, s] = <q[d, head h], k[s, head h]> / sqrt(d_k)   (one matmul)
        qk = lax.dot_general(q_bd, k, (((1,), (1,)), ((), ())),
                             preferred_element_type=jnp.float32)    # (H*N, N)
        # rk[h*N+d, s] = <relation_att[h]/sqrt(d_k), k[s, head h]>  (constant LHS)
        rk = lax.dot_general(ra, k, (((1,), (1,)), ((), ())),
                             preferred_element_type=jnp.float32)    # (H*N, N)

        ew_t = jnp.concatenate([ew] * N_HEADS, axis=0)               # (H*N, N)
        mask_t = jnp.concatenate([mask_add] * N_HEADS, axis=0)       # (H*N, N)
        scores = qk + ew_t * rk + mask_t

        # Stacked masked softmax over source nodes, all heads at once.
        # Precondition (matches DGL mailbox semantics): every dst node has at
        # least one incoming edge (the example graphs guarantee self-loops).
        m = jnp.max(scores, axis=-1, keepdims=True)
        p = jnp.exp(scores - m)                      # masked entries exp(-1e30)->0
        attn = p / jnp.sum(p, axis=-1, keepdims=True)   # exact division (fix)

        # Aggregate values for all heads with one matmul, then fold head blocks
        # back into a lane-dense (N, OUT) tile.
        agg = jnp.dot(attn, v, preferred_element_type=jnp.float32)   # (H*N, OUT)
        agg = agg * hm                               # keep each row's own-head lanes
        t = agg[0:N]
        for h in range(1, N_HEADS):
            t = t + agg[h * N:(h + 1) * N]           # (N, OUT)
        graph_outs.append(jnp.maximum(t, 0.0))       # ReLU; Dropout is identity (eval)

    # Single lane-dense (N, GB*OUT) = (16, 128) store.
    out_ref[0] = jnp.concatenate(graph_outs, axis=-1)


# -------------------------- one-time param folding ---------------------------
def fold_params(Wk, bk, Wq, bq, Wv, bv, ratt, rmsg):
    """Fold relation_msg into Wv/bv, 1/sqrt(d_k) into Wq/bq and relation_att,
    fold the biases into the projection matrix (ones-column trick), and lay
    relation_att / head masks out block-diagonally for the fused head math."""
    # relation_msg folded into the value projection:
    Wv_f = jnp.einsum('ihd,hde->ihe',
                      Wv.reshape(IN_DIM, N_HEADS, D_K), rmsg).reshape(IN_DIM, OUT_DIM)
    bv_f = jnp.einsum('hd,hde->he',
                      bv.reshape(N_HEADS, D_K), rmsg).reshape(1, OUT_DIM)
    # 1/sqrt(d_k) folded into q:
    Wq_s = Wq / SQRT_DK
    bq_s = bq / SQRT_DK
    w = jnp.concatenate([Wk, Wq_s, Wv_f], axis=1)                 # (IN, 3*OUT)
    b = jnp.concatenate([bk, bq_s, bv_f], axis=1)                 # (1, 3*OUT)
    w_kqv = jnp.concatenate([w, b], axis=0)                       # (IN+1, 3*OUT)

    # block-diagonal, pre-scaled relation_att rows: (H, OUT) -> repeat per dst row
    eye_h = jnp.eye(N_HEADS, dtype=jnp.float32)
    ratt_bd = (eye_h[:, :, None] * (ratt / SQRT_DK)[None, :, :]
               ).reshape(N_HEADS, OUT_DIM)                        # (H, OUT)
    rattbig = jnp.repeat(ratt_bd, N, axis=0)                      # (H*N, OUT)

    # head mask: headmask[h*N+d, c] = 1 iff c // d_k == h
    row_head = jnp.arange(HN) // N
    lane_head = jnp.arange(OUT_DIM) // D_K
    headmask = (row_head[:, None] == lane_head[None, :]).astype(jnp.float32)
    return w_kqv, headmask, rattbig


# ------------------------------- entry point ---------------------------------
@jax.jit
def message_passing(x, w_kqv, headmask, rattbig, aewm):
    B = x.shape[0]
    assert B % GB == 0, "batch must be a multiple of GB"
    n_chunks = B // GB

    # bias fold: append a constant-1 column; flatten graphs along sublanes
    ones = jnp.ones((B, N, 1), x.dtype)
    x_aug = jnp.concatenate([x, ones], axis=-1).reshape(B * N, IN_DIM + 1)

    out_packed = pl.pallas_call(
        hgt_kernel,
        out_shape=jax.ShapeDtypeStruct((n_chunks, N, GB * OUT_DIM), jnp.float32),
        grid=(n_chunks,),
        in_specs=[
            pl.BlockSpec((GB * N, IN_DIM + 1), lambda i: (i, 0)),      # x (per chunk)
            pl.BlockSpec((IN_DIM + 1, 3 * OUT_DIM), lambda i: (0, 0)),  # weights (resident)
            pl.BlockSpec((HN, OUT_DIM), lambda i: (0, 0)),              # head mask (resident)
            pl.BlockSpec((HN, OUT_DIM), lambda i: (0, 0)),              # relation_att (resident)
            pl.BlockSpec((GB, 2, N, N), lambda i: (i, 0, 0, 0)),        # mask/edge-weight
        ],
        out_specs=pl.BlockSpec((1, N, GB * OUT_DIM), lambda i: (i, 0, 0)),
        compiler_params=pltpu.CompilerParams(
            dimension_semantics=("parallel",)),
    )(x_aug, w_kqv, headmask, rattbig, aewm)

    # unpack the lane-dense (chunk, N, GB*OUT) layout back to (B, N, OUT)
    out = out_packed.reshape(n_chunks, N, GB, OUT_DIM)
    out = out.transpose(0, 2, 1, 3).reshape(B, N, OUT_DIM)
    return out


# ------------------------------ reference (jnp) ------------------------------
def reference(x, Wk, bk, Wq, bq, Wv, bv, ratt, rmsg, adj, ew):
    HI = jax.lax.Precision.HIGHEST
    B = x.shape[0]
    k = (jnp.dot(x, Wk, precision=HI) + bk).reshape(B, N, N_HEADS, D_K)
    q = (jnp.dot(x, Wq, precision=HI) + bq).reshape(B, N, N_HEADS, D_K)
    v = (jnp.dot(x, Wv, precision=HI) + bv).reshape(B, N, N_HEADS, D_K)
    qk = jnp.einsum('bnhd,bmhd->bnmh', q, k, precision=HI)        # (B, dst, src, H)
    rk = jnp.einsum('bmhd,hd->bmh', k, ratt, precision=HI)        # (B, src, H)
    scores = (qk + ew[..., None] * rk[:, None, :, :]) / SQRT_DK
    scores = jnp.where(adj[..., None] > 0, scores, -1e30)
    scores = scores - scores.max(axis=2, keepdims=True)
    p = jnp.exp(scores) * adj[..., None]
    attn = p / p.sum(axis=2, keepdims=True)
    val = jnp.einsum('bmhd,hde->bmhe', v, rmsg, precision=HI)     # (B, src, H, d_k)
    out = jnp.einsum('bnmh,bmhd->bnhd', attn, val,
                     precision=HI).reshape(B, N, OUT_DIM)
    return jnp.maximum(out, 0.0)


# --------------------------- deterministic params ----------------------------
def _xavier(key, shape, fan_in, fan_out, gain=math.sqrt(2.0)):
    bound = gain * math.sqrt(6.0 / (fan_in + fan_out))
    return jax.random.uniform(key, shape, jnp.float32, -bound, bound)


if __name__ == "__main__":
    key = jax.random.PRNGKey(0)
    ks = jax.random.split(key, 16)
    B = 8                                              # batch of graphs

    # node features
    x = jax.random.normal(ks[0], (B, N, IN_DIM), jnp.float32)

    # Linear params (stored as (in_dim, out_dim), i.e. transposed torch weight)
    Wk = _xavier(ks[1], (IN_DIM, OUT_DIM), IN_DIM, OUT_DIM)
    Wq = _xavier(ks[2], (IN_DIM, OUT_DIM), IN_DIM, OUT_DIM)
    Wv = _xavier(ks[3], (IN_DIM, OUT_DIM), IN_DIM, OUT_DIM)
    stdv = 1.0 / math.sqrt(OUT_DIM)
    bk = jax.random.uniform(ks[4], (1, OUT_DIM), jnp.float32, -stdv, stdv)
    bq = jax.random.uniform(ks[5], (1, OUT_DIM), jnp.float32, -stdv, stdv)
    bv = jax.random.uniform(ks[6], (1, OUT_DIM), jnp.float32, -stdv, stdv)

    # relation_att (H, d_k, 1) -> squeeze last dim; relation_msg (H, d_k, d_k)
    ratt = _xavier(ks[7], (N_HEADS, D_K, 1), D_K, N_HEADS)[:, :, 0]
    rmsg = _xavier(ks[8], (N_HEADS, D_K, D_K), D_K * D_K, N_HEADS * D_K)

    # dense graphs: random adjacency with guaranteed self-loops, scalar weights
    adj = (jax.random.uniform(ks[9], (B, N, N)) < 0.5).astype(jnp.float32)
    adj = jnp.maximum(adj, jnp.eye(N, dtype=jnp.float32)[None])
    ew = jax.random.uniform(ks[10], (B, N, N), jnp.float32) * adj
    # host-side check of the softmax precondition (>=1 in-edge per dst node)
    assert bool((np.asarray(adj).sum(axis=-1) >= 1).all())

    # additive mask (0 on edges, -1e30 off edges) packed with the edge weights
    mask_add = jnp.where(adj > 0, 0.0, -1e30).astype(jnp.float32)
    aewm = jnp.stack([mask_add, ew], axis=1)           # (B, 2, N, N)

    # one-time folding of stored weights
    w_kqv, headmask, rattbig = fold_params(Wk, bk, Wq, bq, Wv, bv, ratt, rmsg)

    out = message_passing(x, w_kqv, headmask, rattbig, aewm)
    out = jax.block_until_ready(out)

    ref = reference(x, Wk, bk, Wq, bq, Wv, bv, ratt, rmsg, adj, ew)
    np.testing.assert_allclose(np.asarray(out), np.asarray(ref),
                               rtol=5e-4, atol=5e-4)

    print("KERNEL_OK")
</pallas_src>

<mosaic_0001>
module attributes {stable_mosaic.version = 11 : i64} {
  func.func @hgt_kernel(%arg0: i32, %arg1: memref<64x33xf32, #tpu.memory_space<vmem>>, %arg2: memref<33x96xf32, #tpu.memory_space<vmem>>, %arg3: memref<64x32xf32, #tpu.memory_space<vmem>>, %arg4: memref<64x32xf32, #tpu.memory_space<vmem>>, %arg5: memref<4x2x16x16xf32, #tpu.memory_space<vmem>>, %arg6: memref<1x16x128xf32, #tpu.memory_space<vmem>>) attributes {dimension_semantics = [#tpu.dimension_semantics<parallel>], iteration_bounds = array<i64: 2>, scalar_prefetch = 0 : i64, scratch_operands = 0 : i64, tpu.core_type = #tpu.core_type<tc>, window_params = [{transform_indices = @transform_0, window_bounds = array<i64: 64, 33>}, {pipeline_mode = #tpu.pipeline_mode<synchronous>, transform_indices = @transform_1, window_bounds = array<i64: 33, 96>}, {pipeline_mode = #tpu.pipeline_mode<synchronous>, transform_indices = @transform_2, window_bounds = array<i64: 64, 32>}, {pipeline_mode = #tpu.pipeline_mode<synchronous>, transform_indices = @transform_3, window_bounds = array<i64: 64, 32>}, {transform_indices = @transform_4, window_bounds = array<i64: 4, 2, 16, 16>}, {transform_indices = @transform_5, window_bounds = array<i64: 1, 16, 128>}]} {
    %c0 = arith.constant 0 : index
    %c0_0 = arith.constant 0 : index
    %0 = vector.load %arg1[%c0, %c0_0] : memref<64x33xf32, #tpu.memory_space<vmem>>, vector<64x33xf32>
    %c0_1 = arith.constant 0 : index
    %c0_2 = arith.constant 0 : index
    %1 = vector.load %arg2[%c0_1, %c0_2] : memref<33x96xf32, #tpu.memory_space<vmem>>, vector<33x96xf32>
    %cst = arith.constant dense<0.000000e+00> : vector<64x96xf32>
    %2 = tpu.matmul %0, %1, %cst {dimension_numbers = #tpu.dot_dimension_numbers<[1], [0], [0], [1], [0, 0, 1, 1], [], []>} : vector<64x33xf32>, vector<33x96xf32>, vector<64x96xf32> -> vector<64x96xf32>
    %c0_3 = arith.constant 0 : index
    %c0_4 = arith.constant 0 : index
    %3 = vector.load %arg3[%c0_3, %c0_4] : memref<64x32xf32, #tpu.memory_space<vmem>>, vector<64x32xf32>
    %c0_5 = arith.constant 0 : index
    %c0_6 = arith.constant 0 : index
    %4 = vector.load %arg4[%c0_5, %c0_6] : memref<64x32xf32, #tpu.memory_space<vmem>>, vector<64x32xf32>
    %5 = vector.extract_strided_slice %2 {offsets = [0, 0], sizes = [16, 96], strides = [1, 1]} : vector<64x96xf32> to vector<16x96xf32>
    %6 = vector.extract_strided_slice %5 {offsets = [0, 0], sizes = [16, 32], strides = [1, 1]} : vector<16x96xf32> to vector<16x32xf32>
    %7 = vector.extract_strided_slice %5 {offsets = [0, 32], sizes = [16, 32], strides = [1, 1]} : vector<16x96xf32> to vector<16x32xf32>
    %8 = vector.extract_strided_slice %5 {offsets = [0, 64], sizes = [16, 32], strides = [1, 1]} : vector<16x96xf32> to vector<16x32xf32>
    %c0_7 = arith.constant 0 : index
    %c0_8 = arith.constant 0 : index
    %c0_9 = arith.constant 0 : index
    %c0_10 = arith.constant 0 : index
    %9 = vector.load %arg5[%c0_7, %c0_8, %c0_9, %c0_10] : memref<4x2x16x16xf32, #tpu.memory_space<vmem>>, vector<1x1x16x16xf32>
    %10 = vector.shape_cast %9 : vector<1x1x16x16xf32> to vector<16x16xf32>
    %c0_11 = arith.constant 0 : index
    %c1 = arith.constant 1 : index
    %c0_12 = arith.constant 0 : index
    %c0_13 = arith.constant 0 : index
    %11 = vector.load %arg5[%c0_11, %c1, %c0_12, %c0_13] : memref<4x2x16x16xf32, #tpu.memory_space<vmem>>, vector<1x1x16x16xf32>
    %12 = vector.shape_cast %11 : vector<1x1x16x16xf32> to vector<16x16xf32>
    %13 = tpu.concatenate %7, %7, %7, %7 in 0 : vector<16x32xf32>, vector<16x32xf32>, vector<16x32xf32>, vector<16x32xf32> -> vector<64x32xf32>
    %14 = arith.mulf %13, %3 : vector<64x32xf32>
    %cst_14 = arith.constant dense<0.000000e+00> : vector<64x16xf32>
    %15 = tpu.matmul %14, %6, %cst_14 {dimension_numbers = #tpu.dot_dimension_numbers<[1], [1], [0], [0], [0, 0, 1, 0], [], []>} : vector<64x32xf32>, vector<16x32xf32>, vector<64x16xf32> -> vector<64x16xf32>
    %cst_15 = arith.constant dense<0.000000e+00> : vector<64x16xf32>
    %16 = tpu.matmul %4, %6, %cst_15 {dimension_numbers = #tpu.dot_dimension_numbers<[1], [1], [0], [0], [0, 0, 1, 0], [], []>} : vector<64x32xf32>, vector<16x32xf32>, vector<64x16xf32> -> vector<64x16xf32>
    %17 = tpu.concatenate %12, %12, %12, %12 in 0 : vector<16x16xf32>, vector<16x16xf32>, vector<16x16xf32>, vector<16x16xf32> -> vector<64x16xf32>
    %18 = tpu.concatenate %10, %10, %10, %10 in 0 : vector<16x16xf32>, vector<16x16xf32>, vector<16x16xf32>, vector<16x16xf32> -> vector<64x16xf32>
    %19 = arith.mulf %17, %16 : vector<64x16xf32>
    %20 = arith.addf %15, %19 : vector<64x16xf32>
    %21 = arith.addf %20, %18 : vector<64x16xf32>
    %cst_16 = arith.constant dense<0xFF800000> : vector<64xf32>
    %22 = vector.multi_reduction <maximumf>, %21, %cst_16 [1] : vector<64x16xf32> to vector<64xf32>
    %23 = vector.shape_cast %22 : vector<64xf32> to vector<64x1xf32>
    %24 = vector.broadcast %23 : vector<64x1xf32> to vector<64x16xf32>
    %25 = arith.subf %21, %24 : vector<64x16xf32>
    %26 = math.exp %25 : vector<64x16xf32>
    %cst_17 = arith.constant dense<0.000000e+00> : vector<64xf32>
    %27 = vector.multi_reduction <add>, %26, %cst_17 [1] : vector<64x16xf32> to vector<64xf32>
    %28 = vector.shape_cast %27 : vector<64xf32> to vector<64x1xf32>
    %29 = vector.broadcast %28 : vector<64x1xf32> to vector<64x16xf32>
    %30 = arith.divf %26, %29 : vector<64x16xf32>
    %cst_18 = arith.constant dense<0.000000e+00> : vector<64x32xf32>
    %31 = tpu.matmul %30, %8, %cst_18 {dimension_numbers = #tpu.dot_dimension_numbers<[1], [0], [0], [1], [0, 0, 1, 1], [], []>} : vector<64x16xf32>, vector<16x32xf32>, vector<64x32xf32> -> vector<64x32xf32>
    %32 = arith.mulf %31, %3 : vector<64x32xf32>
    %33 = vector.extract_strided_slice %32 {offsets = [0, 0], sizes = [16, 32], strides = [1, 1]} : vector<64x32xf32> to vector<16x32xf32>
    %34 = vector.extract_strided_slice %32 {offsets = [16, 0], sizes = [16, 32], strides = [1, 1]} : vector<64x32xf32> to vector<16x32xf32>
    %35 = arith.addf %33, %34 : vector<16x32xf32>
    %36 = vector.extract_strided_slice %32 {offsets = [32, 0], sizes = [16, 32], strides = [1, 1]} : vector<64x32xf32> to vector<16x32xf32>
    %37 = arith.addf %35, %36 : vector<16x32xf32>
    %38 = vector.extract_strided_slice %32 {offsets = [48, 0], sizes = [16, 32], strides = [1, 1]} : vector<64x32xf32> to vector<16x32xf32>
    %39 = arith.addf %37, %38 : vector<16x32xf32>
    %cst_19 = arith.constant 0.000000e+00 : f32
    %40 = vector.broadcast %cst_19 : f32 to vector<16x32xf32>
    %41 = arith.maximumf %39, %40 : vector<16x32xf32>
    %42 = vector.extract_strided_slice %2 {offsets = [16, 0], sizes = [16, 96], strides = [1, 1]} : vector<64x96xf32> to vector<16x96xf32>
    %43 = vector.extract_strided_slice %42 {offsets = [0, 0], sizes = [16, 32], strides = [1, 1]} : vector<16x96xf32> to vector<16x32xf32>
    %44 = vector.extract_strided_slice %42 {offsets = [0, 32], sizes = [16, 32], strides = [1, 1]} : vector<16x96xf32> to vector<16x32xf32>
    %45 = vector.extract_strided_slice %42 {offsets = [0, 64], sizes = [16, 32], strides = [1, 1]} : vector<16x96xf32> to vector<16x32xf32>
    %c1_20 = arith.constant 1 : index
    %c0_21 = arith.constant 0 : index
    %c0_22 = arith.constant 0 : index
    %c0_23 = arith.constant 0 : index
    %46 = vector.load %arg5[%c1_20, %c0_21, %c0_22, %c0_23] : memref<4x2x16x16xf32, #tpu.memory_space<vmem>>, vector<1x1x16x16xf32>
    %47 = vector.shape_cast %46 : vector<1x1x16x16xf32> to vector<16x16xf32>
    %c1_24 = arith.constant 1 : index
    %c1_25 = arith.constant 1 : index
    %c0_26 = arith.constant 0 : index
    %c0_27 = arith.constant 0 : index
    %48 = vector.load %arg5[%c1_24, %c1_25, %c0_26, %c0_27] : memref<4x2x16x16xf32, #tpu.memory_space<vmem>>, vector<1x1x16x16xf32>
    %49 = vector.shape_cast %48 : vector<1x1x16x16xf32> to vector<16x16xf32>
    %50 = tpu.concatenate %44, %44, %44, %44 in 0 : vector<16x32xf32>, vector<16x32xf32>, vector<16x32xf32>, vector<16x32xf32> -> vector<64x32xf32>
    %51 = arith.mulf %50, %3 : vector<64x32xf32>
    %cst_28 = arith.constant dense<0.000000e+00> : vector<64x16xf32>
    %52 = tpu.matmul %51, %43, %cst_28 {dimension_numbers = #tpu.dot_dimension_numbers<[1], [1], [0], [0], [0, 0, 1, 0], [], []>} : vector<64x32xf32>, vector<16x32xf32>, vector<64x16xf32> -> vector<64x16xf32>
    %cst_29 = arith.constant dense<0.000000e+00> : vector<64x16xf32>
    %53 = tpu.matmul %4, %43, %cst_29 {dimension_numbers = #tpu.dot_dimension_numbers<[1], [1], [0], [0], [0, 0, 1, 0], [], []>} : vector<64x32xf32>, vector<16x32xf32>, vector<64x16xf32> -> vector<64x16xf32>
    %54 = tpu.concatenate %49, %49, %49, %49 in 0 : vector<16x16xf32>, vector<16x16xf32>, vector<16x16xf32>, vector<16x16xf32> -> vector<64x16xf32>
    %55 = tpu.concatenate %47, %47, %47, %47 in 0 : vector<16x16xf32>, vector<16x16xf32>, vector<16x16xf32>, vector<16x16xf32> -> vector<64x16xf32>
    %56 = arith.mulf %54, %53 : vector<64x16xf32>
    %57 = arith.addf %52, %56 : vector<64x16xf32>
    %58 = arith.addf %57, %55 : vector<64x16xf32>
    %cst_30 = arith.constant dense<0xFF800000> : vector<64xf32>
    %59 = vector.multi_reduction <maximumf>, %58, %cst_30 [1] : vector<64x16xf32> to vector<64xf32>
    %60 = vector.shape_cast %59 : vector<64xf32> to vector<64x1xf32>
    %61 = vector.broadcast %60 : vector<64x1xf32> to vector<64x16xf32>
    %62 = arith.subf %58, %61 : vector<64x16xf32>
    %63 = math.exp %62 : vector<64x16xf32>
    %cst_31 = arith.constant dense<0.000000e+00> : vector<64xf32>
    %64 = vector.multi_reduction <add>, %63, %cst_31 [1] : vector<64x16xf32> to vector<64xf32>
    %65 = vector.shape_cast %64 : vector<64xf32> to vector<64x1xf32>
    %66 = vector.broadcast %65 : vector<64x1xf32> to vector<64x16xf32>
    %67 = arith.divf %63, %66 : vector<64x16xf32>
    %cst_32 = arith.constant dense<0.000000e+00> : vector<64x32xf32>
    %68 = tpu.matmul %67, %45, %cst_32 {dimension_numbers = #tpu.dot_dimension_numbers<[1], [0], [0], [1], [0, 0, 1, 1], [], []>} : vector<64x16xf32>, vector<16x32xf32>, vector<64x32xf32> -> vector<64x32xf32>
    %69 = arith.mulf %68, %3 : vector<64x32xf32>
    %70 = vector.extract_strided_slice %69 {offsets = [0, 0], sizes = [16, 32], strides = [1, 1]} : vector<64x32xf32> to vector<16x32xf32>
    %71 = vector.extract_strided_slice %69 {offsets = [16, 0], sizes = [16, 32], strides = [1, 1]} : vector<64x32xf32> to vector<16x32xf32>
    %72 = arith.addf %70, %71 : vector<16x32xf32>
    %73 = vector.extract_strided_slice %69 {offsets = [32, 0], sizes = [16, 32], strides = [1, 1]} : vector<64x32xf32> to vector<16x32xf32>
    %74 = arith.addf %72, %73 : vector<16x32xf32>
    %75 = vector.extract_strided_slice %69 {offsets = [48, 0], sizes = [16, 32], strides = [1, 1]} : vector<64x32xf32> to vector<16x32xf32>
    %76 = arith.addf %74, %75 : vector<16x32xf32>
    %cst_33 = arith.constant 0.000000e+00 : f32
    %77 = vector.broadcast %cst_33 : f32 to vector<16x32xf32>
    %78 = arith.maximumf %76, %77 : vector<16x32xf32>
    %79 = vector.extract_strided_slice %2 {offsets = [32, 0], sizes = [16, 96], strides = [1, 1]} : vector<64x96xf32> to vector<16x96xf32>
    %80 = vector.extract_strided_slice %79 {offsets = [0, 0], sizes = [16, 32], strides = [1, 1]} : vector<16x96xf32> to vector<16x32xf32>
    %81 = vector.extract_strided_slice %79 {offsets = [0, 32], sizes = [16, 32], strides = [1, 1]} : vector<16x96xf32> to vector<16x32xf32>
    %82 = vector.extract_strided_slice %79 {offsets = [0, 64], sizes = [16, 32], strides = [1, 1]} : vector<16x96xf32> to vector<16x32xf32>
    %c2 = arith.constant 2 : index
    %c0_34 = arith.constant 0 : index
    %c0_35 = arith.constant 0 : index
    %c0_36 = arith.constant 0 : index
    %83 = vector.load %arg5[%c2, %c0_34, %c0_35, %c0_36] : memref<4x2x16x16xf32, #tpu.memory_space<vmem>>, vector<1x1x16x16xf32>
    %84 = vector.shape_cast %83 : vector<1x1x16x16xf32> to vector<16x16xf32>
    %c2_37 = arith.constant 2 : index
    %c1_38 = arith.constant 1 : index
    %c0_39 = arith.constant 0 : index
    %c0_40 = arith.constant 0 : index
    %85 = vector.load %arg5[%c2_37, %c1_38, %c0_39, %c0_40] : memref<4x2x16x16xf32, #tpu.memory_space<vmem>>, vector<1x1x16x16xf32>
    %86 = vector.shape_cast %85 : vector<1x1x16x16xf32> to vector<16x16xf32>
    %87 = tpu.concatenate %81, %81, %81, %81 in 0 : vector<16x32xf32>, vector<16x32xf32>, vector<16x32xf32>, vector<16x32xf32> -> vector<64x32xf32>
    %88 = arith.mulf %87, %3 : vector<64x32xf32>
    %cst_41 = arith.constant dense<0.000000e+00> : vector<64x16xf32>
    %89 = tpu.matmul %88, %80, %cst_41 {dimension_numbers = #tpu.dot_dimension_numbers<[1], [1], [0], [0], [0, 0, 1, 0], [], []>} : vector<64x32xf32>, vector<16x32xf32>, vector<64x16xf32> -> vector<64x16xf32>
    %cst_42 = arith.constant dense<0.000000e+00> : vector<64x16xf32>
    %90 = tpu.matmul %4, %80, %cst_42 {dimension_numbers = #tpu.dot_dimension_numbers<[1], [1], [0], [0], [0, 0, 1, 0], [], []>} : vector<64x32xf32>, vector<16x32xf32>, vector<64x16xf32> -> vector<64x16xf32>
    %91 = tpu.concatenate %86, %86, %86, %86 in 0 : vector<16x16xf32>, vector<16x16xf32>, vector<16x16xf32>, vector<16x16xf32> -> vector<64x16xf32>
    %92 = tpu.concatenate %84, %84, %84, %84 in 0 : vector<16x16xf32>, vector<16x16xf32>, vector<16x16xf32>, vector<16x16xf32> -> vector<64x16xf32>
    %93 = arith.mulf %91, %90 : vector<64x16xf32>
    %94 = arith.addf %89, %93 : vector<64x16xf32>
    %95 = arith.addf %94, %92 : vector<64x16xf32>
    %cst_43 = arith.constant dense<0xFF800000> : vector<64xf32>
    %96 = vector.multi_reduction <maximumf>, %95, %cst_43 [1] : vector<64x16xf32> to vector<64xf32>
    %97 = vector.shape_cast %96 : vector<64xf32> to vector<64x1xf32>
    %98 = vector.broadcast %97 : vector<64x1xf32> to vector<64x16xf32>
    %99 = arith.subf %95, %98 : vector<64x16xf32>
    %100 = math.exp %99 : vector<64x16xf32>
    %cst_44 = arith.constant dense<0.000000e+00> : vector<64xf32>
    %101 = vector.multi_reduction <add>, %100, %cst_44 [1] : vector<64x16xf32> to vector<64xf32>
    %102 = vector.shape_cast %101 : vector<64xf32> to vector<64x1xf32>
    %103 = vector.broadcast %102 : vector<64x1xf32> to vector<64x16xf32>
    %104 = arith.divf %100, %103 : vector<64x16xf32>
    %cst_45 = arith.constant dense<0.000000e+00> : vector<64x32xf32>
    %105 = tpu.matmul %104, %82, %cst_45 {dimension_numbers = #tpu.dot_dimension_numbers<[1], [0], [0], [1], [0, 0, 1, 1], [], []>} : vector<64x16xf32>, vector<16x32xf32>, vector<64x32xf32> -> vector<64x32xf32>
    %106 = arith.mulf %105, %3 : vector<64x32xf32>
    %107 = vector.extract_strided_slice %106 {offsets = [0, 0], sizes = [16, 32], strides = [1, 1]} : vector<64x32xf32> to vector<16x32xf32>
    %108 = vector.extract_strided_slice %106 {offsets = [16, 0], sizes = [16, 32], strides = [1, 1]} : vector<64x32xf32> to vector<16x32xf32>
    %109 = arith.addf %107, %108 : vector<16x32xf32>
    %110 = vector.extract_strided_slice %106 {offsets = [32, 0], sizes = [16, 32], strides = [1, 1]} : vector<64x32xf32> to vector<16x32xf32>
    %111 = arith.addf %109, %110 : vector<16x32xf32>
    %112 = vector.extract_strided_slice %106 {offsets = [48, 0], sizes = [16, 32], strides = [1, 1]} : vector<64x32xf32> to vector<16x32xf32>
    %113 = arith.addf %111, %112 : vector<16x32xf32>
    %cst_46 = arith.constant 0.000000e+00 : f32
    %114 = vector.broadcast %cst_46 : f32 to vector<16x32xf32>
    %115 = arith.maximumf %113, %114 : vector<16x32xf32>
    %116 = vector.extract_strided_slice %2 {offsets = [48, 0], sizes = [16, 96], strides = [1, 1]} : vector<64x96xf32> to vector<16x96xf32>
    %117 = vector.extract_strided_slice %116 {offsets = [0, 0], sizes = [16, 32], strides = [1, 1]} : vector<16x96xf32> to vector<16x32xf32>
    %118 = vector.extract_strided_slice %116 {offsets = [0, 32], sizes = [16, 32], strides = [1, 1]} : vector<16x96xf32> to vector<16x32xf32>
    %119 = vector.extract_strided_slice %116 {offsets = [0, 64], sizes = [16, 32], strides = [1, 1]} : vector<16x96xf32> to vector<16x32xf32>
    %c3 = arith.constant 3 : index
    %c0_47 = arith.constant 0 : index
    %c0_48 = arith.constant 0 : index
    %c0_49 = arith.constant 0 : index
    %120 = vector.load %arg5[%c3, %c0_47, %c0_48, %c0_49] : memref<4x2x16x16xf32, #tpu.memory_space<vmem>>, vector<1x1x16x16xf32>
    %121 = vector.shape_cast %120 : vector<1x1x16x16xf32> to vector<16x16xf32>
    %c3_50 = arith.constant 3 : index
    %c1_51 = arith.constant 1 : index
    %c0_52 = arith.constant 0 : index
    %c0_53 = arith.constant 0 : index
    %122 = vector.load %arg5[%c3_50, %c1_51, %c0_52, %c0_53] : memref<4x2x16x16xf32, #tpu.memory_space<vmem>>, vector<1x1x16x16xf32>
    %123 = vector.shape_cast %122 : vector<1x1x16x16xf32> to vector<16x16xf32>
    %124 = tpu.concatenate %118, %118, %118, %118 in 0 : vector<16x32xf32>, vector<16x32xf32>, vector<16x32xf32>, vector<16x32xf32> -> vector<64x32xf32>
    %125 = arith.mulf %124, %3 : vector<64x32xf32>
    %cst_54 = arith.constant dense<0.000000e+00> : vector<64x16xf32>
    %126 = tpu.matmul %125, %117, %cst_54 {dimension_numbers = #tpu.dot_dimension_numbers<[1], [1], [0], [0], [0, 0, 1, 0], [], []>} : vector<64x32xf32>, vector<16x32xf32>, vector<64x16xf32> -> vector<64x16xf32>
    %cst_55 = arith.constant dense<0.000000e+00> : vector<64x16xf32>
    %127 = tpu.matmul %4, %117, %cst_55 {dimension_numbers = #tpu.dot_dimension_numbers<[1], [1], [0], [0], [0, 0, 1, 0], [], []>} : vector<64x32xf32>, vector<16x32xf32>, vector<64x16xf32> -> vector<64x16xf32>
    %128 = tpu.concatenate %123, %123, %123, %123 in 0 : vector<16x16xf32>, vector<16x16xf32>, vector<16x16xf32>, vector<16x16xf32> -> vector<64x16xf32>
    %129 = tpu.concatenate %121, %121, %121, %121 in 0 : vector<16x16xf32>, vector<16x16xf32>, vector<16x16xf32>, vector<16x16xf32> -> vector<64x16xf32>
    %130 = arith.mulf %128, %127 : vector<64x16xf32>
    %131 = arith.addf %126, %130 : vector<64x16xf32>
    %132 = arith.addf %131, %129 : vector<64x16xf32>
    %cst_56 = arith.constant dense<0xFF800000> : vector<64xf32>
    %133 = vector.multi_reduction <maximumf>, %132, %cst_56 [1] : vector<64x16xf32> to vector<64xf32>
    %134 = vector.shape_cast %133 : vector<64xf32> to vector<64x1xf32>
    %135 = vector.broadcast %134 : vector<64x1xf32> to vector<64x16xf32>
    %136 = arith.subf %132, %135 : vector<64x16xf32>
    %137 = math.exp %136 : vector<64x16xf32>
    %cst_57 = arith.constant dense<0.000000e+00> : vector<64xf32>
    %138 = vector.multi_reduction <add>, %137, %cst_57 [1] : vector<64x16xf32> to vector<64xf32>
    %139 = vector.shape_cast %138 : vector<64xf32> to vector<64x1xf32>
    %140 = vector.broadcast %139 : vector<64x1xf32> to vector<64x16xf32>
    %141 = arith.divf %137, %140 : vector<64x16xf32>
    %cst_58 = arith.constant dense<0.000000e+00> : vector<64x32xf32>
    %142 = tpu.matmul %141, %119, %cst_58 {dimension_numbers = #tpu.dot_dimension_numbers<[1], [0], [0], [1], [0, 0, 1, 1], [], []>} : vector<64x16xf32>, vector<16x32xf32>, vector<64x32xf32> -> vector<64x32xf32>
    %143 = arith.mulf %142, %3 : vector<64x32xf32>
    %144 = vector.extract_strided_slice %143 {offsets = [0, 0], sizes = [16, 32], strides = [1, 1]} : vector<64x32xf32> to vector<16x32xf32>
    %145 = vector.extract_strided_slice %143 {offsets = [16, 0], sizes = [16, 32], strides = [1, 1]} : vector<64x32xf32> to vector<16x32xf32>
    %146 = arith.addf %144, %145 : vector<16x32xf32>
    %147 = vector.extract_strided_slice %143 {offsets = [32, 0], sizes = [16, 32], strides = [1, 1]} : vector<64x32xf32> to vector<16x32xf32>
    %148 = arith.addf %146, %147 : vector<16x32xf32>
    %149 = vector.extract_strided_slice %143 {offsets = [48, 0], sizes = [16, 32], strides = [1, 1]} : vector<64x32xf32> to vector<16x32xf32>
    %150 = arith.addf %148, %149 : vector<16x32xf32>
    %cst_59 = arith.constant 0.000000e+00 : f32
    %151 = vector.broadcast %cst_59 : f32 to vector<16x32xf32>
    %152 = arith.maximumf %150, %151 : vector<16x32xf32>
    %153 = tpu.concatenate %41, %78, %115, %152 in 1 : vector<16x32xf32>, vector<16x32xf32>, vector<16x32xf32>, vector<16x32xf32> -> vector<16x128xf32>
    %c0_60 = arith.constant 0 : index
    %c0_61 = arith.constant 0 : index
    %c0_62 = arith.constant 0 : index
    %154 = vector.load %arg6[%c0_60, %c0_61, %c0_62] : memref<1x16x128xf32, #tpu.memory_space<vmem>>, vector<1x16x128xf32>
    %155 = vector.shape_cast %154 : vector<1x16x128xf32> to vector<16x128xf32>
    %156 = vector.shape_cast %153 : vector<16x128xf32> to vector<1x16x128xf32>
    tpu.vector_store %arg6[%c0_60, %c0_61, %c0_62], %156 {strides = array<i32>} : memref<1x16x128xf32, #tpu.memory_space<vmem>>, vector<1x16x128xf32>,
    return
  }
  func.func @transform_0(%arg0: i32) -> (i32, i32) {
    %c0_i32 = arith.constant 0 : i32
    %c0_i32_0 = arith.constant 0 : i32
    return %arg0, %c0_i32 : i32, i32
  }
  func.func @transform_1(%arg0: i32) -> (i32, i32) {
    %c0_i32 = arith.constant 0 : i32
    %c0_i32_0 = arith.constant 0 : i32
    %c0_i32_1 = arith.constant 0 : i32
    return %c0_i32, %c0_i32_0 : i32, i32
  }
  func.func @transform_2(%arg0: i32) -> (i32, i32) {
    %c0_i32 = arith.constant 0 : i32
    %c0_i32_0 = arith.constant 0 : i32
    %c0_i32_1 = arith.constant 0 : i32
    return %c0_i32, %c0_i32_0 : i32, i32
  }
  func.func @transform_3(%arg0: i32) -> (i32, i32) {
    %c0_i32 = arith.constant 0 : i32
    %c0_i32_0 = arith.constant 0 : i32
    %c0_i32_1 = arith.constant 0 : i32
    return %c0_i32, %c0_i32_0 : i32, i32
  }
  func.func @transform_4(%arg0: i32) -> (i32, i32, i32, i32) {
    %c0_i32 = arith.constant 0 : i32
    %c0_i32_0 = arith.constant 0 : i32
    %c0_i32_1 = arith.constant 0 : i32
    %c0_i32_2 = arith.constant 0 : i32
    return %arg0, %c0_i32, %c0_i32_0, %c0_i32_1 : i32, i32, i32, i32
  }
  func.func @transform_5(%arg0: i32) -> (i32, i32, i32) {
    %c0_i32 = arith.constant 0 : i32
    %c0_i32_0 = arith.constant 0 : i32
    %c0_i32_1 = arith.constant 0 : i32
    return %arg0, %c0_i32, %c0_i32_0 : i32, i32, i32
  }
}

</mosaic_0001>

<bundles_post_ra>
// kernel: message_passing.1
= control target key start
LH: loop header
LB: loop body
LE: loop exit
PB: predicated region body
PF: predicated region fallthrough
CT: control target
= control target key end

     0   :  { %s3455_s18 = smov 0   ;;  %s4204_s0 = inlined_call_operand.vmem [shape: f32[128,33], index: 0, kind: input, shape index: {}]   ;;  %s4205_s1 = inlined_call_operand.vmem [shape: f32[33,96], index: 1, kind: input, shape index: {}]   ;;  %s4206_s2 = inlined_call_operand.vmem [shape: f32[64,32], index: 2, kind: input, shape index: {}]   ;;  %s4207_s3 = inlined_call_operand.vmem [shape: f32[64,32], index: 3, kind: input, shape index: {}]   ;;  %s4208_s4 = inlined_call_operand.vmem [shape: f32[8,2,16,16], index: 4, kind: input, shape index: {}]   ;;  %s4209_s5 = inlined_call_operand.vmem [shape: f32[2,16,128], index: 5, kind: output, shape index: {}]  }
   0x1 LB: > { %s3461_s19 = sadd.s32 4294967295, %s3420_s18   ;;  %p2677_p0 = scmp.ge.s32.totalorder %s3420_s18, 1  ;;  %s3420_s18 = sphi %s3455_s18, %s15_s18  }
   0x2   : > { %p200_p1 = scmp.lt.s32.totalorder %s3420_s18, 3 }
   0x4   : > { %p201_p2 = pnand %p2677_p0, %p200_p1 }
   0x6   : > { %204 = sbr.rel (%p201_p2) target bundleno = 3002 (0xbba), region = 40 }
   0xd   : > { %v260_v0 = vld [vmem:[%s4205_s1] sm:$0xff]  ;;  %v261_v1 = vld [vmem:[%s4205_s1 + $0x8] sm:$0xff]  ;;  %v262_v2 = vld [vmem:[%s4205_s1 + $0x10] sm:$0xff]  ;;  %s2678_s26 = sshll.u32 %s3461_s19, 3  ;;  %s3422_s6 = smov 32   ;;  %vm265_vm0 = vcmask 269312  }
   0xe   : > { %v3171_v3 = vpack.c.bf16 %v261_v1, %v260_v0  ;;  %v263_v4 = vld [vmem:[%s4205_s1 + $0x18] sm:$0xff]  ;;  %p235_p3 = scmp.lt.s32.totalorder %s2678_s26, 15  ;;  %v3481_v5 = vld [vmem:[%s4206_s2 + $0x10] sm:$0xff]  ;;  %v3488_v7 = vld [vmem:[%s4206_s2] sm:$0xff]  ;;  %vm290_vm1 = vcmask 1040384   ;;  %vm460_vm2 = vcmask 261120  }
   0xf   : > { %v3175_v6 = vpack.c.bf16 %v263_v4, %v262_v2  ;;  %432 = vrot.lane.b32.xlu1 %v3481_v5, %s3422_s6  ;;  %428 = vrot.lane.b32.xlu0 %v3488_v7, %s3422_s6  ;;  %v3495_v8 = vld [vmem:[%s4206_s2 + $0x18] sm:$0xff]  ;;  %v3500_v9 = vld [vmem:[%s4206_s2 + $0x8] sm:$0xff]  ;;  %vm3578_vm3 = vmpackc.low %vm460_vm2, %vm460_vm2  ;;  %s3423_s9 = smov 96   ;;  %s2680_s24 = sshll.u32 %s3461_s19, 2  ;;  %vm757_vm4 = vcmask 130048   ;;  %vm2598_vm5 = vcmask 523264  }
  0x10   : > { %3172 = vmatprep.subr.bf16.mxu0 %v3171_v3  ;;  %s4221_s26 = smov (!%p235_p3, %s2678_s26), 15  ;;  %v264_v10 = vld [vmem:[%s4205_s1 + $0x20] sm:$0x1]  ;;  %v3515_v12 = vld [vmem:[%s4206_s2 + $0x28] sm:$0xff]  ;;  %v3530_v16 = vld [vmem:[%s4206_s2 + $0x38] sm:$0xff]  ;;  %p241_p4 = scmp.lt.s32.totalorder %s2680_s24, 7 }
  0x11   : > { %3174 = vmatpush3.bf16.msra.mxu0 %v3171_v3  ;;  %s2679_s13 = sshll.u32 %s4221_s26, 3  ;;  %v3521_v13 = vld [vmem:[%s4206_s2 + $0x20] sm:$0xff]  ;;  %v3535_v17 = vld [vmem:[%s4206_s2 + $0x30] sm:$0xff]  ;;  %v3627_v46 = vld [vmem:[%s4207_s3 + $0x8] sm:$0xff]  ;;  %s3424_s29 = smov 64   ;;  %vm2601_vm6 = vcmask 785408  }
  0x12   : > { %3176 = vmatprep.subr.bf16.mxu0 %v3175_v6  ;;  %s238_s20 = scalar_lea.vmem %s4204_s0, %s2679_s13  ;;  %v3551_v23 = vld [vmem:[%s4207_s3 + $0x20] sm:$0xff]  ;;  %v3634_v48 = vld [vmem:[%s4207_s3 + $0x28] sm:$0xff]  ;;  %v3642_v50 = vld [vmem:[%s4207_s3 + $0x30] sm:$0xff]  ;;  %s4223_s24 = smov (!%p241_p4, %s2680_s24), 7 }
  0x13   : > { %434 = vrot.lane.b32.xlu1 %v3495_v8, %s3422_s6  ;;  %v252_v11 = vld [vmem:[%s238_s20] sm:$0xff]  ;;  %430 = vrot.lane.b32.xlu0 %v3500_v9, %s3422_s6  ;;  %v253_v14 = vld [vmem:[%s238_s20 + $0x8] sm:$0xff]  ;;  %s2822_s25 = sshll.u32 %s4223_s24, 5  ;;  %p247_p5 = scmp.lt.s32.totalorder %s3461_s19, 1 }
  0x14   : > { %2967 = vmatprep.mubr.msk.f32.mxu0 %vm265_vm0, %v252_v11  ;;  %v254_v15 = vld [vmem:[%s238_s20 + $0x10] sm:$0xff]  ;;  %v255_v18 = vld [vmem:[%s238_s20 + $0x18] sm:$0xff]  ;;  %v256_v19 = vld [vmem:[%s238_s20 + $0x20] sm:$0xff]  ;;  %2989 = vmatprep.mubr.msk.f32.mxu1 %vm460_vm2, %v3551_v23  ;;  %s3734_s28 = scalar_lea.vmem %s4208_s4, %s2822_s25 }
  0x15   : > { %3178 = vmatpush3.bf16.msra.mxu0 %v3175_v6  ;;  %v257_v20 = vld [vmem:[%s238_s20 + $0x28] sm:$0xff]  ;;  %v258_v21 = vld [vmem:[%s238_s20 + $0x30] sm:$0xff]  ;;  %v259_v22 = vld [vmem:[%s238_s20 + $0x38] sm:$0xff]  ;;  %s4225_s19 = smov (!%p247_p5, %s3461_s19), 1 }
  0x16   : > { %2965 = vmatprep.subr.msk.mxu0 %vm290_vm1, %v264_v10  ;;  %v3558_v24 = vld [vmem:[%s4207_s3] sm:$0xff]  ;;  %v3653_v53 = vld [vmem:[%s4207_s3 + $0x10] sm:$0xff]  ;;  %v3665_v56 = vld [vmem:[%s4207_s3 + $0x18] sm:$0xff] }
  0x17   : > { %438 = vrot.lane.b32.xlu1 %v3515_v12, %s3422_s6  ;;  %436 = vrot.lane.b32.xlu0 %v3521_v13, %s3422_s6  ;;  %v3674_v57 = vld [vmem:[%s4207_s3 + $0x38] sm:$0xff] }
  0x19   : > { %2966 = vmatpush3.msk.msra.mxu0 %vm290_vm1, %v264_v10 }
  0x1a   : > { %2968 = vmatmul.mubr.msk.f32.vlgmr.msra.gmra.mrb[0].mxu0 %vm265_vm0, %v253_v14 }
  0x1b   : > { %2970 = vmatprep.mubr.msk.f32.mxu0 %vm265_vm0, %v254_v15  ;;  %442 = vrot.lane.b32.xlu1 %v3530_v16, %s3422_s6 }
  0x1c   : > { %440 = vrot.lane.b32.xlu0 %v3535_v17, %s3422_s6 }
  0x1e   : > { %2971 = vmatmul.mubr.msk.f32.gmra.mrb[2].mxu0 %vm265_vm0, %v255_v18 }
  0x1f   : > { %2973 = vmatprep.mubr.msk.f32.mxu0 %vm265_vm0, %v256_v19 }
  0x22   : > { %2974 = vmatmul.mubr.msk.f32.gmra.mrb[4].mxu0 %vm265_vm0, %v257_v20 }
  0x23   : > { %2976 = vmatprep.mubr.msk.f32.mxu0 %vm265_vm0, %v258_v21 }
  0x26   : > { %2977 = vmatmul.mubr.msk.f32.gmra.mrb[6].mxu0 %vm265_vm0, %v259_v22 }
  0x27   : > { %2983 = vmatprep.mubr.msk.f32.mxu0 %vm460_vm2, %v3558_v24 }
  0x81   : > { %v3562_v25 = vpop.permute.xlu1 %432  ;;  %v3564_v26 = vpop.permute.xlu0 %428 }
  0x85   : > { %v3566_v27 = vpop.permute.xlu1 %434  ;;  %v3568_v28 = vpop.permute.xlu0 %430 }
  0x89   : > { %v3589_v36 = vpop.permute.xlu1 %438  ;;  %v3604_v40 = vpop.permute.xlu0 %436 }
  0x8d   : > { %v3629_v47 = vpop.permute.xlu1 %442 }
  0x8e   : > { %v3644_v51 = vpop.permute.xlu0 %440 }
  0xed   : > { %v3570_v29 = vpop.f32.mrb[0].mxu0 }
  0xee   : > { %v3572_v30 = vpop.f32.mrb[1].mxu0  ;;  %v453_v31 = vmul.f32 %v3570_v29, %v3568_v28  ;;  %v455_v39 = vmul.f32 %v3570_v29, %v3566_v27  ;;  %v457_v45 = vmul.f32 %v3570_v29, %v3589_v36  ;;  %v459_v55 = vmul.f32 %v3570_v29, %v3629_v47 }
  0xef   : > { %v3179_v33 = vpack.c.bf16 %v3570_v29, %v3572_v30  ;;  %v452_v34 = vmul.f32 %v3564_v26, %v3572_v30  ;;  %v454_v42 = vmul.f32 %v3562_v25, %v3572_v30  ;;  %v456_v49 = vmul.f32 %v3604_v40, %v3572_v30 }
  0xf0   : > { %614 = vrot.lane.b32.xlu1 %v453_v31, %s3423_s9  ;;  %v458_v58 = vmul.f32 %v3644_v51, %v3572_v30 }
  0xf1   : > { %3181 = vmatprep.subr.msk.bf16.mxu0 %vm3578_vm3, %v3179_v33  ;;  %3243 = vmatprep.subr.msk.bf16.mxu1 %vm3578_vm3, %v3179_v33  ;;  %v3595_v37 = vpop.f32.mrb[2].mxu0 }
  0xf2   : > { %612 = vrot.lane.b32.xlu0 %v452_v34, %s3423_s9  ;;  %v3598_v38 = vpop.f32.mrb[3].mxu0  ;;  %3184 = vmatpush3.bf16.xpose.msk.msra.mxu0 %vm3578_vm3, %v3179_v33  ;;  %v2694_v34 = vld [vmem:[%s3734_s28 + $0x10] sm:$0xff] }
  0xf3   : > { %3244 = vmatpush3.bf16.xpose.msk.msra.mxu1 %vm3578_vm3, %v3179_v33  ;;  %v3610_v41 = vpack.c.bf16 %v3595_v37, %v3598_v38 }
  0xf4   : > { %3187 = vmatprep.subr.msk.bf16.mxu1 %vm3578_vm3, %v3179_v33  ;;  %618 = vrot.lane.b32.xlu1 %v455_v39, %s3423_s9 }
  0xf5   : > { %v3617_v43 = vpop.f32.mrb[4].mxu0 }
  0xf6   : > { %616 = vrot.lane.b32.xlu0 %v454_v42, %s3423_s9  ;;  %v3620_v44 = vpop.f32.mrb[5].mxu0 }
  0xf7   : > { %v3720_v4 = vpack.c.bf16 %v3617_v43, %v3620_v44 }
  0xf8   : > { %622 = vrot.lane.b32.xlu1 %v457_v45, %s3423_s9 }
  0xf9   : > { %v3646_v52 = vpop.f32.mrb[6].mxu0  ;;  %2984 = vmatmul.mubr.msk.f32.vlgmr.msra.gmra.mrb[8].mxu0 %vm460_vm2, %v3627_v46 }
  0xfa   : > { %620 = vrot.lane.b32.xlu0 %v456_v49, %s3423_s9  ;;  %v3656_v54 = vpop.f32.mrb[7].mxu0  ;;  %2990 = vmatmul.mubr.msk.f32.vlgmr.msra.gmra.mrb[0].mxu1 %vm460_vm2, %v3634_v48  ;;  %v416_v49 = vld [vmem:[%s3734_s28 + $0x8] sm:$0xff] }
  0xfb   : > { %4214 = vst [vmem:[#allocation2_spill] sm:$0xff] %v3656_v54  ;;  %3190 = vmatpush3.bf16.xpose.msk.msra.mxu1 %vm3578_vm3, %v3179_v33  ;;  %2992 = vmatprep.mubr.msk.f32.mxu1 %vm460_vm2, %v3642_v50  ;;  %v3726_v10 = vpack.c.bf16 %v3646_v52, %v3656_v54  ;;  %v2695_v33 = vld [vmem:[%s3734_s28 + $0x18] sm:$0xff] }
  0xfc   : > { %626 = vrot.lane.b32.xlu1 %v459_v55, %s3423_s9  ;;  %2986 = vmatprep.mubr.msk.f32.mxu0 %vm460_vm2, %v3653_v53 }
  0xfd   : > { %2987 = vmatmul.mubr.msk.f32.gmra.mrb[10].mxu0 %vm460_vm2, %v3665_v56  ;;  %3197 = vmatprep.subr.msk.bf16.mxu1 %vm3578_vm3, %v3610_v41 }
  0xfe   : > { %624 = vrot.lane.b32.xlu0 %v458_v58, %s3423_s9  ;;  %2993 = vmatmul.mubr.msk.f32.gmra.mrb[2].mxu1 %vm460_vm2, %v3674_v57 }
 0x162   : > { %v615_v59 = vpop.permute.xlu1 %614 }
 0x164   : > { %v613_v60 = vpop.permute.xlu0 %612 }
 0x165   : > { %2999 = vmatprep.mubr.msk.f32.mxu1 %vm460_vm2, %v613_v60  ;;  %v415_v60 = vld [vmem:[%s3734_s28] sm:$0xff] }
 0x166   : > { %3000 = vmatmul.mubr.msk.f32.vlgmr.msra.gmra.mrb[4].mxu1 %vm460_vm2, %v615_v59  ;;  %v619_v61 = vpop.permute.xlu1 %618 }
 0x167   : > { %3200 = vmatpush3.bf16.xpose.msk.msra.mxu1 %vm3578_vm3, %v3610_v41 }
 0x168   : > { %v617_v62 = vpop.permute.xlu0 %616 }
 0x169   : > { %3002 = vmatprep.mubr.msk.f32.mxu1 %vm460_vm2, %v617_v62 }
 0x16a   : > { %3003 = vmatmul.mubr.msk.f32.gmra.mrb[6].mxu1 %vm460_vm2, %v619_v61  ;;  %v623_v63 = vpop.permute.xlu1 %622 }
 0x16c   : > { %v621_v0 = vpop.permute.xlu0 %620 }
 0x16d   : > { %3005 = vmatprep.mubr.msk.f32.mxu1 %vm460_vm2, %v621_v0 }
 0x16e   : > { %3006 = vmatmul.mubr.msk.f32.gmra.mrb[8].mxu1 %vm460_vm2, %v623_v63  ;;  %v627_v2 = vpop.permute.xlu1 %626 }
 0x170   : > { %v625_v1 = vpop.permute.xlu0 %624 }
 0x171   : > { %3008 = vmatprep.mubr.msk.f32.mxu1 %vm460_vm2, %v625_v1 }
 0x172   : > { %3009 = vmatmul.mubr.msk.f32.gmra.mrb[10].mxu1 %vm460_vm2, %v627_v2 }
 0x173   : > { %3031 = vmatprep.mubr.msk.f32.mxu1 %vm460_vm2, %v3558_v24 }
 0x176   : > { %3032 = vmatmul.mubr.msk.f32.vlgmr.msra.gmra.mrb[12].mxu1 %vm460_vm2, %v3627_v46 }
 0x177   : > { %3034 = vmatprep.mubr.msk.f32.mxu1 %vm460_vm2, %v3653_v53 }
 0x17a   : > { %3035 = vmatmul.mubr.msk.f32.gmra.mrb[14].mxu1 %vm460_vm2, %v3665_v56 }
 0x17b   : > { %3037 = vmatprep.mubr.msk.f32.mxu1 %vm460_vm2, %v3551_v23 }
 0x17e   : > { %3038 = vmatmul.mubr.msk.f32.gmra.mrb[16].mxu1 %vm460_vm2, %v3634_v48 }
 0x17f   : > { %3040 = vmatprep.mubr.msk.f32.mxu1 %vm460_vm2, %v3642_v50 }
 0x182   : > { %3041 = vmatmul.mubr.msk.f32.gmra.mrb[18].mxu1 %vm460_vm2, %v3674_v57 }
 0x1cc   : > { %v2985_v14 = vpop.f32.mrb[8].mxu0 }
 0x1cd   : > { %v2991_v15 = vpop.f32.mrb[0].mxu1  ;;  %v557_v18 = vpop.f32.mrb[9].mxu0  ;;  %v597_v39 = vmul.f32 %v2985_v14, %v2695_v33 }
 0x1ce   : > { %v577_v19 = vpop.f32.mrb[1].mxu1  ;;  %v596_v42 = vmul.f32 %v2694_v34, %v557_v18  ;;  %v601_v18 = vmul.f32 %v2991_v15, %v2695_v33 }
 0x1d0   : > { %v2988_v20 = vpop.f32.mrb[10].mxu0 }
 0x1d1   : > { %v2994_v21 = vpop.f32.mrb[2].mxu1  ;;  %v567_v22 = vpop.f32.mrb[11].mxu0  ;;  %v599_v58 = vmul.f32 %v2988_v20, %v2695_v33 }
 0x1d2   : > { %v587_v31 = vpop.f32.mrb[3].mxu1  ;;  %v598_v62 = vmul.f32 %v2694_v34, %v567_v22 }
 0x239   : > { %v3001_v45 = vpop.f32.mrb[4].mxu1 }
 0x23a   : > { %v716_v55 = vadd.f32 %v3001_v45, %v597_v39  ;;  %v710_v59 = vpop.f32.mrb[5].mxu1  ;;  %v600_v39 = vmul.f32 %v2694_v34, %v577_v19 }
 0x23b   : > { %v711_v61 = vadd.f32 %v710_v59, %v596_v42 }
 0x23c   : > { %v750_v63 = vadd.f32 %v716_v55, %v416_v49 }
 0x23d   : > { %v3004_v0 = vpop.f32.mrb[6].mxu1  ;;  %v749_v1 = vadd.f32 %v711_v61, %v415_v60  ;;  %v603_v61 = vmul.f32 %v2994_v21, %v2695_v33 }
 0x23e   : > { %v726_v2 = vadd.f32 %v3004_v0, %v599_v58  ;;  %v720_v11 = vpop.f32.mrb[7].mxu1  ;;  %v761_v6 = vsel %vm757_vm4, %v750_v63, -inf  ;;  %v602_v58 = vmul.f32 %v2694_v34, %v587_v31 }
 0x23f   : > { %v721_v3 = vadd.f32 %v720_v11, %v598_v62  ;;  %762 = vmax.xlane.f32.xlu1 %v761_v6  ;;  %v758_v14 = vsel %vm757_vm4, %v749_v1, -inf }
 0x240   : > { %759 = vmax.xlane.f32.xlu0 %v758_v14  ;;  %v752_v59 = vadd.f32 %v726_v2, %v416_v49 }
 0x241   : > { %v3007_v20 = vpop.f32.mrb[8].mxu1  ;;  %v751_v45 = vadd.f32 %v721_v3, %v415_v60 }
 0x242   : > { %v736_v35 = vadd.f32 %v3007_v20, %v601_v18  ;;  %v730_v42 = vpop.f32.mrb[9].mxu1  ;;  %v767_v19 = vsel %vm757_vm4, %v752_v59, -inf }
 0x243   : > { %v731_v22 = vadd.f32 %v730_v42, %v600_v39  ;;  %v764_v55 = vsel %vm757_vm4, %v751_v45, -inf }
 0x244   : > { %765 = vmax.xlane.f32.xlu0 %v764_v55  ;;  %v754_v14 = vadd.f32 %v736_v35, %v416_v49  ;;  %v4215_v35 = vpack.i.bf16 %v3570_v29, %v3572_v30 }
 0x245   : > { %v3010_v0 = vpop.f32.mrb[10].mxu1  ;;  %v753_v54 = vadd.f32 %v731_v22, %v415_v60 }
 0x246   : > { %v746_v11 = vadd.f32 %v3010_v0, %v603_v61  ;;  %v740_v6 = vpop.f32.mrb[11].mxu1  ;;  %v773_v21 = vsel %vm757_vm4, %v754_v14, -inf }
 0x247   : > { %v741_v62 = vadd.f32 %v740_v6, %v602_v58  ;;  %v770_v15 = vsel %vm757_vm4, %v753_v54, -inf }
 0x248   : > { %771 = vmax.xlane.f32.xlu1 %v770_v15  ;;  %768 = vmax.xlane.f32.xlu0 %v767_v19  ;;  %v756_v31 = vadd.f32 %v746_v11, %v416_v49 }
 0x249   : > { %v3745_v3 = vadd.f32 %v741_v62, %v415_v60 }
 0x24a   : > { %v779_v33 = vsel %vm757_vm4, %v756_v31, -inf }
 0x24b   : > { %v776_v2 = vsel %vm757_vm4, %v3745_v3, -inf }
 0x24c   : > { %777 = vmax.xlane.f32.xlu1 %v776_v2  ;;  %774 = vmax.xlane.f32.xlu0 %v773_v21 }
 0x250   : > { %780 = vmax.xlane.f32.xlu0 %v779_v33 }
 0x25d   : > { %3257 = vrot.lane.b32.xlu1 %v4215_v35, %s3424_s29 }
 0x2cc   : > { %v763_v34 = vpop.xlane.xlu1 %762 }
 0x2cd   : > { %v783_v60 = vsub.f32 %v750_v63, %v763_v34  ;;  %v760_v18 = vpop.xlane.xlu0 %759 }
 0x2ce   : > { %v782_v39 = vsub.f32 %v749_v1, %v760_v18 }
 0x2cf   : > { %v792_v20 = vmul.f32 1.442695, %v783_v60 }
 0x2d0   : > { %v790_v42 = vmul.f32 1.442695, %v782_v39 }
 0x2d1   : > { %3276 = vpow2.f32 %v792_v20  ;;  %v766_v22 = vpop.xlane.xlu0 %765 }
 0x2d2   : > { %3278 = vpow2.f32 %v790_v42  ;;  %v784_v49 = vsub.f32 %v751_v45, %v766_v22 }
 0x2d4   : > { %v794_v55 = vmul.f32 1.442695, %v784_v49 }
 0x2d5   : > { %v772_v61 = vpop.xlane.xlu1 %771  ;;  %v769_v58 = vpop.xlane.xlu0 %768 }
 0x2d6   : > { %3280 = vpow2.f32 %v794_v55  ;;  %v786_v0 = vsub.f32 %v753_v54, %v772_v61  ;;  %v785_v11 = vsub.f32 %v752_v59, %v769_v58  ;;  %v1004_v58 = vmul.f32 %v3595_v37, %v3568_v28 }
 0x2d8   : > { %v798_v6 = vmul.f32 1.442695, %v786_v0  ;;  %v796_v62 = vmul.f32 1.442695, %v785_v11  ;;  %v1003_v0 = vmul.f32 %v3564_v26, %v3598_v38 }
 0x2d9   : > { %v778_v29 = vpop.xlane.xlu1 %777  ;;  %v775_v30 = vpop.xlane.xlu0 %774 }
 0x2da   : > { %3282 = vpow2.f32 %v798_v6  ;;  %v787_v63 = vsub.f32 %v754_v14, %v775_v30  ;;  %v788_v11 = vsub.f32 %v3745_v3, %v778_v29  ;;  %v1006_v6 = vmul.f32 %v3595_v37, %v3566_v27 }
 0x2db   : > { %v3755_v15 = vpop.eup %3276  ;;  %3284 = vpow2.f32 %v796_v62  ;;  %v1008_v30 = vmul.f32 %v3595_v37, %v3589_v36 }
 0x2dc   : > { %v3757_v1 = vpop.eup %3278  ;;  %v800_v19 = vmul.f32 1.442695, %v787_v63  ;;  %v809_v45 = vsel %vm757_vm4, %v3755_v15, 0.0  ;;  %v802_v62 = vmul.f32 1.442695, %v788_v11  ;;  %v1010_v63 = vmul.f32 %v3595_v37, %v3629_v47 }
 0x2dd   : > { %v3258_v2 = vpop.permute.xlu1 %3257  ;;  %810 = vadd.xlane.f32.xlu0 %v809_v45  ;;  %v781_v21 = vpop.xlane.xlu0 %780  ;;  %v806_v54 = vsel %vm757_vm4, %v3757_v1, 0.0  ;;  %v1007_v45 = vmul.f32 %v3604_v40, %v3598_v38 }
 0x2de   : > { %v3260_v59 = vunpack.i.h.bf16 %v3258_v2  ;;  %v3259_v33 = vunpack.i.l.bf16 %v3258_v2  ;;  %v789_v35 = vsub.f32 %v756_v31, %v781_v21  ;;  %807 = vadd.xlane.f32.xlu1 %v806_v54  ;;  %3286 = vpow2.f32 %v800_v19 }
 0x2df   : > { %v1005_v19 = vmul.f32 %v3562_v25, %v3598_v38  ;;  %v1009_v2 = vmul.f32 %v3644_v51, %v3598_v38 }
 0x2e0   : > { %v3763_v14 = vpop.eup %3280  ;;  %v3191_v34 = vpack.c.bf16 %v3260_v59, %v3259_v33  ;;  %v804_v60 = vmul.f32 1.442695, %v789_v35 }
 0x2e1   : > { %v812_v18 = vsel %vm757_vm4, %v3763_v14, 0.0 }
 0x2e2   : > { %3288 = vpow2.f32 %v804_v60  ;;  %3192 = vmatprep.subr.bf16.mxu0 %v3191_v34  ;;  %813 = vadd.xlane.f32.xlu1 %v812_v18 }
 0x2e3   : > { %3194 = vmatpush3.bf16.msra.mxu0 %v3191_v34  ;;  %3290 = vpow2.f32 %v802_v62 }
 0x2e4   : > { %v3283_v39 = vpop.eup %3282  ;;  %3203 = vmatprep.subr.msk.bf16.mxu0 %vm3578_vm3, %v3610_v41 }
 0x2e5   : > { %v3285_v20 = vpop.eup %3284  ;;  %v818_v31 = vsel %vm757_vm4, %v3283_v39, 0.0 }
 0x2e6   : > { %819 = vadd.xlane.f32.xlu1 %v818_v31  ;;  %v815_v42 = vsel %vm757_vm4, %v3285_v20, 0.0 }
 0x2e7   : > { %816 = vadd.xlane.f32.xlu0 %v815_v42 }
 0x2e8   : > { %v3287_v22 = vpop.eup %3286 }
 0x2e9   : > { %v821_v49 = vsel %vm757_vm4, %v3287_v22, 0.0 }
 0x2eb   : > { %822 = vadd.xlane.f32.xlu0 %v821_v49 }
 0x2ec   : > { %v3773_v55 = vpop.eup %3288 }
 0x2ed   : > { %v827_v61 = vsel %vm757_vm4, %v3773_v55, 0.0  ;;  %v3291_v3 = vpop.eup %3290 }
 0x2ee   : > { %v824_v29 = vsel %vm757_vm4, %v3291_v3, 0.0 }
 0x2ef   : > { %828 = vadd.xlane.f32.xlu0 %v827_v61 }
 0x2f7   : > { %1140 = vrot.lane.b32.xlu1 %v1004_v58, %s3423_s9 }
 0x305   : > { %1138 = vrot.lane.b32.xlu0 %v1003_v0, %s3423_s9 }
 0x309   : > { %1144 = vrot.lane.b32.xlu0 %v1006_v6, %s3423_s9 }
 0x30d   : > { %1148 = vrot.lane.b32.xlu0 %v1008_v30, %s3423_s9 }
 0x311   : > { %1152 = vrot.lane.b32.xlu0 %v1010_v63, %s3423_s9 }
 0x31b   : > { %825 = vadd.xlane.f32.xlu1 %v824_v29 }
 0x32c   : > { %1142 = vrot.lane.b32.xlu1 %v1005_v19, %s3423_s9 }
 0x330   : > { %1146 = vrot.lane.b32.xlu1 %v1007_v45, %s3423_s9 }
 0x334   : > { %1150 = vrot.lane.b32.xlu1 %v1009_v2, %s3423_s9 }
 0x36a   : > { %v811_v21 = vpop.xlane.xlu0 %810 }
 0x36b   : > { %3292 = vrcp.f32 %v811_v21  ;;  %v808_v54 = vpop.xlane.xlu1 %807 }
 0x36c   : > { %3294 = vrcp.f32 %v808_v54 }
 0x36f   : > { %v814_v59 = vpop.xlane.xlu1 %813 }
 0x370   : > { %3296 = vrcp.f32 %v814_v59 }
 0x373   : > { %v820_v33 = vpop.xlane.xlu1 %819 }
 0x374   : > { %3298 = vrcp.f32 %v820_v33  ;;  %v817_v35 = vpop.xlane.xlu0 %816 }
 0x375   : > { %v3293_v34 = vpop.eup %3292  ;;  %3300 = vrcp.f32 %v817_v35 }
 0x376   : > { %v3295_v60 = vpop.eup %3294  ;;  %v833_v31 = vmul.f32 %v3293_v34, %v3755_v15 }
 0x377   : > { %v831_v18 = vmul.f32 %v3295_v60, %v3757_v1 }
 0x378   : > { %v823_v42 = vpop.xlane.xlu0 %822 }
 0x379   : > { %3302 = vrcp.f32 %v823_v42  ;;  %3015 = vmatprep.mubr.msk.f32.mxu0 %vm757_vm4, %v831_v18 }
 0x37a   : > { %v3297_v49 = vpop.eup %3296  ;;  %3016 = vmatmul.mubr.msk.f32.vlgmr.msra.gmra.mrb[12].mxu0 %vm757_vm4, %v833_v31 }
 0x37b   : > { %3206 = vmatpush3.bf16.xpose.msk.msra.mxu0 %vm3578_vm3, %v3610_v41  ;;  %v835_v61 = vmul.f32 %v3297_v49, %v3763_v14  ;;  %v1141_v41 = vpop.permute.xlu1 %1140 }
 0x37c   : > { %3213 = vmatprep.subr.msk.bf16.mxu0 %vm3578_vm3, %v3720_v4  ;;  %v829_v14 = vpop.xlane.xlu0 %828 }
 0x37d   : > { %3018 = vmatprep.mubr.msk.f32.mxu0 %vm757_vm4, %v835_v61  ;;  %3304 = vrcp.f32 %v829_v14 }
 0x37e   : > { %v3299_v15 = vpop.eup %3298 }
 0x37f   : > { %v3301_v1 = vpop.eup %3300  ;;  %v839_v58 = vmul.f32 %v3299_v15, %v3283_v39 }
 0x380   : > { %v837_v0 = vmul.f32 %v3301_v1, %v3285_v20  ;;  %v1139_v29 = vpop.permute.xlu0 %1138 }
 0x382   : > { %3019 = vmatmul.mubr.msk.f32.gmra.mrb[14].mxu0 %vm757_vm4, %v837_v0 }
 0x383   : > { %v3303_v11 = vpop.eup %3302  ;;  %3021 = vmatprep.mubr.msk.f32.mxu0 %vm757_vm4, %v839_v58 }
 0x384   : > { %v841_v6 = vmul.f32 %v3303_v11, %v3287_v22  ;;  %v1145_v22 = vpop.permute.xlu0 %1144 }
 0x386   : > { %3022 = vmatmul.mubr.msk.f32.gmra.mrb[16].mxu0 %vm757_vm4, %v841_v6 }
 0x387   : > { %v3305_v30 = vpop.eup %3304 }
 0x388   : > { %v845_v39 = vmul.f32 %v3305_v30, %v3773_v55  ;;  %v1149_v55 = vpop.permute.xlu0 %1148 }
 0x38c   : > { %v1153_v2 = vpop.permute.xlu0 %1152 }
 0x3a8   : > { %v826_v62 = vpop.xlane.xlu1 %825 }
 0x3a9   : > { %3306 = vrcp.f32 %v826_v62 }
 0x3ac   : > { %v1143_v20 = vpop.permute.xlu1 %1142 }
 0x3b0   : > { %v1147_v45 = vpop.permute.xlu1 %1146 }
 0x3b3   : > { %v3307_v63 = vpop.eup %3306 }
 0x3b4   : > { %v843_v19 = vmul.f32 %v3307_v63, %v3291_v3  ;;  %v1151_v3 = vpop.permute.xlu1 %1150  ;;  %v2726_v63 = vld [vmem:[%s3734_s28 + $0x30] sm:$0xff] }
 0x3b6   : > { %3024 = vmatprep.mubr.msk.f32.mxu0 %vm757_vm4, %v843_v19 }
 0x3b7   : > { %3025 = vmatmul.mubr.msk.f32.gmra.mrb[18].mxu0 %vm757_vm4, %v845_v39 }
 0x3b8   : > { %3047 = vmatprep.mubr.msk.f32.mxu0 %vm460_vm2, %v1139_v29 }
 0x3bb   : > { %3048 = vmatmul.mubr.msk.f32.vlgmr.msra.gmra.mrb[20].mxu0 %vm460_vm2, %v1141_v41 }
 0x3bc   : > { %3216 = vmatpush3.bf16.xpose.msk.msra.mxu0 %vm3578_vm3, %v3720_v4  ;;  %3050 = vmatprep.mubr.msk.f32.mxu0 %vm460_vm2, %v1143_v20 }
 0x3bf   : > { %3051 = vmatmul.mubr.msk.f32.gmra.mrb[22].mxu0 %vm460_vm2, %v1145_v22 }
 0x3c0   : > { %3053 = vmatprep.mubr.msk.f32.mxu0 %vm460_vm2, %v1147_v45  ;;  %v2725_v45 = vld [vmem:[%s3734_s28 + $0x28] sm:$0xff] }
 0x3c3   : > { %3054 = vmatmul.mubr.msk.f32.gmra.mrb[24].mxu0 %vm460_vm2, %v1149_v55 }
 0x3c4   : > { %3056 = vmatprep.mubr.msk.f32.mxu0 %vm460_vm2, %v1151_v3 }
 0x3c7   : > { %3057 = vmatmul.mubr.msk.f32.gmra.mrb[26].mxu0 %vm460_vm2, %v1153_v2  ;;  %v2724_v2 = vld [vmem:[%s3734_s28 + $0x20] sm:$0xff] }
 0x3c8   : > { %3079 = vmatprep.mubr.msk.f32.mxu0 %vm460_vm2, %v3558_v24  ;;  %v3033_v24 = vpop.f32.mrb[12].mxu1 }
 0x3c9   : > { %v1083_v21 = vpop.f32.mrb[13].mxu1 }
 0x3ca   : > { %v3036_v54 = vpop.f32.mrb[14].mxu1  ;;  %v1122_v39 = vmul.f32 %v2726_v63, %v1083_v21 }
 0x3cb   : > { %3080 = vmatmul.mubr.msk.f32.vlgmr.msra.gmra.mrb[28].mxu0 %vm460_vm2, %v3627_v46  ;;  %v1093_v59 = vpop.f32.mrb[15].mxu1 }
 0x3cc   : > { %3082 = vmatprep.mubr.msk.f32.mxu0 %vm460_vm2, %v3653_v53  ;;  %v3039_v33 = vpop.f32.mrb[16].mxu1 }
 0x3cd   : > { %v1103_v35 = vpop.f32.mrb[17].mxu1 }
 0x3ce   : > { %v3042_v34 = vpop.f32.mrb[18].mxu1 }
 0x3cf   : > { %3083 = vmatmul.mubr.msk.f32.gmra.mrb[30].mxu0 %vm460_vm2, %v3665_v56  ;;  %v1113_v60 = vpop.f32.mrb[19].mxu1 }
 0x3d0   : > { %3085 = vmatprep.mubr.msk.f32.mxu0 %vm460_vm2, %v3551_v23 }
 0x3d3   : > { %3086 = vmatmul.mubr.msk.f32.gmra.mrb[32].mxu0 %vm460_vm2, %v3634_v48 }
 0x3d4   : > { %3088 = vmatprep.mubr.msk.f32.mxu0 %vm460_vm2, %v3642_v50 }
 0x3d7   : > { %3089 = vmatmul.mubr.msk.f32.gmra.mrb[34].mxu0 %vm460_vm2, %v3674_v57 }
 0x44d   : > { %v3017_v18 = vpop.f32.mrb[12].mxu0 }
 0x44e   : > { %v942_v23 = vpop.f32.mrb[13].mxu0  ;;  %v982_v42 = vmul.f32 %v3017_v18, %v3500_v9  ;;  %v2727_v9 = vld [vmem:[%s3734_s28 + $0x38] sm:$0xff] }
 0x44f   : > { %v981_v15 = vmul.f32 %v942_v23, %v3488_v7  ;;  %v1123_v19 = vmul.f32 %v3033_v24, %v2727_v9  ;;  %v1125_v55 = vmul.f32 %v3036_v54, %v2727_v9  ;;  %v1124_v23 = vmul.f32 %v2726_v63, %v1093_v59 }
 0x450   : > { %v1127_v24 = vmul.f32 %v3039_v33, %v2727_v9 }
 0x455   : > { %v3020_v31 = vpop.f32.mrb[14].mxu0 }
 0x456   : > { %v984_v49 = vmul.f32 %v3020_v31, %v3495_v8  ;;  %v952_v61 = vpop.f32.mrb[15].mxu0 }
 0x457   : > { %v983_v1 = vmul.f32 %v952_v61, %v3481_v5 }
 0x458   : > { %v990_v58 = vadd.f32 %v984_v49, %v982_v42 }
 0x459   : > { %v989_v0 = vadd.f32 %v983_v1, %v981_v15  ;;  %v3023_v11 = vpop.f32.mrb[16].mxu0  ;;  %v1126_v15 = vmul.f32 %v2726_v63, %v1103_v35 }
 0x45a   : > { %v986_v6 = vmul.f32 %v3023_v11, %v3515_v12  ;;  %v962_v41 = vpop.f32.mrb[17].mxu0 }
 0x45b   : > { %v985_v14 = vmul.f32 %v962_v41, %v3521_v13 }
 0x45c   : > { %v992_v62 = vadd.f32 %v990_v58, %v986_v6  ;;  %v1129_v6 = vmul.f32 %v3042_v34, %v2727_v9 }
 0x45d   : > { %v991_v30 = vadd.f32 %v989_v0, %v985_v14 }
 0x48a   : > { %v3026_v8 = vpop.f32.mrb[18].mxu0 }
 0x48b   : > { %v988_v29 = vmul.f32 %v3026_v8, %v3530_v16  ;;  %v972_v7 = vpop.f32.mrb[19].mxu0 }
 0x48c   : > { %v987_v5 = vmul.f32 %v972_v7, %v3535_v17 }
 0x48d   : > { %v3858_v20 = vadd.f32 %v992_v62, %v988_v29  ;;  %v1128_v62 = vmul.f32 %v2726_v63, %v1113_v60 }
 0x48e   : > { %v3860_v12 = vadd.f32 %v991_v30, %v987_v5  ;;  %v3049_v22 = vpop.f32.mrb[20].mxu0 }
 0x48f   : > { %v1242_v13 = vadd.f32 %v3049_v22, %v1123_v19  ;;  %v1236_v3 = vpop.f32.mrb[21].mxu0 }
 0x490   : > { %v1237_v18 = vadd.f32 %v1236_v3, %v1122_v39 }
 0x491   : > { %v1276_v31 = vadd.f32 %v2725_v45, %v1242_v13 }
 0x492   : > { %v3052_v42 = vpop.f32.mrb[22].mxu0  ;;  %v1275_v16 = vadd.f32 %v2724_v2, %v1237_v18 }
 0x493   : > { %v1252_v49 = vadd.f32 %v3052_v42, %v1125_v55  ;;  %v1246_v61 = vpop.f32.mrb[23].mxu0  ;;  %v1286_v17 = vsel %vm757_vm4, %v1276_v31, -inf }
 0x494   : > { %v1247_v21 = vadd.f32 %v1246_v61, %v1124_v23  ;;  %1287 = vmax.xlane.f32.xlu0 %v1286_v17  ;;  %v1283_v1 = vsel %vm757_vm4, %v1275_v16, -inf }
 0x495   : > { %1284 = vmax.xlane.f32.xlu1 %v1283_v1  ;;  %v1278_v58 = vadd.f32 %v2725_v45, %v1252_v49 }
 0x496   : > { %v3055_v54 = vpop.f32.mrb[24].mxu0  ;;  %v1277_v0 = vadd.f32 %v2724_v2, %v1247_v21 }
 0x497   : > { %v1262_v11 = vadd.f32 %v3055_v54, %v1127_v24  ;;  %v1256_v59 = vpop.f32.mrb[25].mxu0  ;;  %v1292_v41 = vsel %vm757_vm4, %v1278_v58, -inf }
 0x498   : > { %v1257_v14 = vadd.f32 %v1256_v59, %v1126_v15  ;;  %v1289_v33 = vsel %vm757_vm4, %v1277_v0, -inf }
 0x499   : > { %1293 = vmax.xlane.f32.xlu1 %v1292_v41  ;;  %1290 = vmax.xlane.f32.xlu0 %v1289_v33  ;;  %v1280_v30 = vadd.f32 %v2725_v45, %v1262_v11 }
 0x49a   : > { %v3058_v35 = vpop.f32.mrb[26].mxu0  ;;  %v1279_v8 = vadd.f32 %v2724_v2, %v1257_v14 }
 0x49b   : > { %v1272_v29 = vadd.f32 %v3058_v35, %v1129_v6  ;;  %v1266_v7 = vpop.f32.mrb[27].mxu0  ;;  %v1298_v19 = vsel %vm757_vm4, %v1280_v30, -inf }
 0x49c   : > { %v1267_v5 = vadd.f32 %v1266_v7, %v1128_v62  ;;  %v1295_v39 = vsel %vm757_vm4, %v1279_v8, -inf }
 0x49d   : > { %1299 = vmax.xlane.f32.xlu1 %v1298_v19  ;;  %1296 = vmax.xlane.f32.xlu0 %v1295_v39  ;;  %v1282_v34 = vadd.f32 %v2725_v45, %v1272_v29 }
 0x49e   : > { %v1281_v9 = vadd.f32 %v2724_v2, %v1267_v5 }
 0x49f   : > { %v1304_v60 = vsel %vm757_vm4, %v1282_v34, -inf }
 0x4a0   : > { %v1301_v63 = vsel %vm757_vm4, %v1281_v9, -inf }
 0x4a1   : > { %1305 = vmax.xlane.f32.xlu1 %v1304_v60  ;;  %1302 = vmax.xlane.f32.xlu0 %v1301_v63 }
 0x521   : > { %v1288_v22 = vpop.xlane.xlu0 %1287 }
 0x522   : > { %v1308_v13 = vsub.f32 %v1276_v31, %v1288_v22  ;;  %v1285_v55 = vpop.xlane.xlu1 %1284  ;;  %v1528_v22 = vmul.f32 %v3564_v26, %v3620_v44 }
 0x523   : > { %v1307_v3 = vsub.f32 %v1275_v16, %v1285_v55  ;;  %v4216_v55 = vpack.i.bf16 %v3595_v37, %v3598_v38  ;;  %v1535_v37 = vmul.f32 %v3617_v43, %v3629_v47  ;;  %v1534_v38 = vmul.f32 %v3644_v51, %v3620_v44 }
 0x524   : > { %v1317_v18 = vmul.f32 1.442695, %v1308_v13  ;;  %v1529_v13 = vmul.f32 %v3617_v43, %v3568_v28 }
 0x525   : > { %v1315_v23 = vmul.f32 1.442695, %v1307_v3  ;;  %v1531_v3 = vmul.f32 %v3617_v43, %v3566_v27 }
 0x526   : > { %3308 = vpow2.f32 %v1317_v18  ;;  %v1294_v42 = vpop.xlane.xlu1 %1293  ;;  %v1291_v49 = vpop.xlane.xlu0 %1290  ;;  %v1530_v18 = vmul.f32 %v3562_v25, %v3620_v44 }
 0x527   : > { %3310 = vpow2.f32 %v1315_v23  ;;  %v1310_v24 = vsub.f32 %v1278_v58, %v1294_v42  ;;  %v1309_v61 = vsub.f32 %v1277_v0, %v1291_v49  ;;  %v1533_v23 = vmul.f32 %v3617_v43, %v3589_v36 }
 0x528   : > { %v1532_v42 = vmul.f32 %v3604_v40, %v3620_v44 }
 0x529   : > { %v1321_v45 = vmul.f32 1.442695, %v1310_v24  ;;  %v1319_v2 = vmul.f32 1.442695, %v1309_v61 }
 0x52a   : > { %v1300_v17 = vpop.xlane.xlu1 %1299  ;;  %v1297_v21 = vpop.xlane.xlu0 %1296 }
 0x52b   : > { %3312 = vpow2.f32 %v1321_v45  ;;  %v1312_v15 = vsub.f32 %v1280_v30, %v1300_v17  ;;  %v1311_v1 = vsub.f32 %v1279_v8, %v1297_v21 }
 0x52c   : > { %3314 = vpow2.f32 %v1319_v2 }
 0x52d   : > { %v1325_v54 = vmul.f32 1.442695, %v1312_v15  ;;  %v1323_v31 = vmul.f32 1.442695, %v1311_v1 }
 0x52e   : > { %v1306_v11 = vpop.xlane.xlu1 %1305  ;;  %v1303_v16 = vpop.xlane.xlu0 %1302 }
 0x52f   : > { %3316 = vpow2.f32 %v1325_v54  ;;  %v1314_v6 = vsub.f32 %v1282_v34, %v1306_v11  ;;  %v1313_v59 = vsub.f32 %v1281_v9, %v1303_v16 }
 0x530   : > { %v3872_v41 = vpop.eup %3308  ;;  %3318 = vpow2.f32 %v1323_v31 }
 0x531   : > { %v3311_v58 = vpop.eup %3310  ;;  %v1329_v0 = vmul.f32 1.442695, %v1314_v6  ;;  %v1327_v14 = vmul.f32 1.442695, %v1313_v59  ;;  %v1334_v62 = vsel %vm757_vm4, %v3872_v41, 0.0 }
 0x532   : > { %1335 = vadd.xlane.f32.xlu1 %v1334_v62  ;;  %v1331_v33 = vsel %vm757_vm4, %v3311_v58, 0.0 }
 0x533   : > { %3320 = vpow2.f32 %v1329_v0  ;;  %1332 = vadd.xlane.f32.xlu0 %v1331_v33 }
 0x534   : > { %3322 = vpow2.f32 %v1327_v14 }
 0x535   : > { %v3877_v30 = vpop.eup %3312 }
 0x536   : > { %v3879_v35 = vpop.eup %3314  ;;  %v1340_v8 = vsel %vm757_vm4, %v3877_v30, 0.0 }
 0x537   : > { %1341 = vadd.xlane.f32.xlu1 %v1340_v8  ;;  %v1337_v29 = vsel %vm757_vm4, %v3879_v35, 0.0 }
 0x538   : > { %1338 = vadd.xlane.f32.xlu0 %v1337_v29 }
 0x539   : > { %v3885_v7 = vpop.eup %3316 }
 0x53a   : > { %v3887_v19 = vpop.eup %3318  ;;  %v1346_v5 = vsel %vm757_vm4, %v3885_v7, 0.0 }
 0x53b   : > { %1347 = vadd.xlane.f32.xlu1 %v1346_v5  ;;  %v1343_v39 = vsel %vm757_vm4, %v3887_v19, 0.0 }
 0x53c   : > { %1344 = vadd.xlane.f32.xlu0 %v1343_v39 }
 0x53d   : > { %v3893_v34 = vpop.eup %3320 }
 0x53e   : > { %v3895_v9 = vpop.eup %3322  ;;  %v1352_v60 = vsel %vm757_vm4, %v3893_v34, 0.0 }
 0x53f   : > { %1353 = vadd.xlane.f32.xlu1 %v1352_v60  ;;  %v1349_v63 = vsel %vm757_vm4, %v3895_v9, 0.0 }
 0x540   : > { %1350 = vadd.xlane.f32.xlu0 %v1349_v63 }
 0x550   : > { %1663 = vrot.lane.b32.xlu1 %v1528_v22, %s3423_s9 }
 0x554   : > { %1665 = vrot.lane.b32.xlu1 %v1529_v13, %s3423_s9 }
 0x556   : > { %3262 = vrot.lane.b32.xlu0 %v4216_v55, %s3424_s29  ;;  %v3404_v55 = vld [vmem:[%s4207_s3] sm:$0xff] }
 0x558   : > { %1669 = vrot.lane.b32.xlu1 %v1531_v3, %s3423_s9  ;;  %v3405_v3 = vld [vmem:[%s4207_s3 + $0x20] sm:$0xff] }
 0x55a   : > { %1667 = vrot.lane.b32.xlu0 %v1530_v18, %s3423_s9 }
 0x55c   : > { %1673 = vrot.lane.b32.xlu1 %v1533_v23, %s3423_s9 }
 0x55e   : > { %1671 = vrot.lane.b32.xlu0 %v1532_v42, %s3423_s9 }
 0x560   : > { %1677 = vrot.lane.b32.xlu1 %v1535_v37, %s3423_s9 }
 0x562   : > { %1675 = vrot.lane.b32.xlu0 %v1534_v38, %s3423_s9 }
 0x5bf   : > { %v1336_v24 = vpop.xlane.xlu1 %1335 }
 0x5c0   : > { %v1333_v49 = vpop.xlane.xlu0 %1332 }
 0x5c1   : > { %3324 = vrcp.f32 %v1333_v49 }
 0x5c2   : > { %3326 = vrcp.f32 %v1336_v24 }
 0x5c4   : > { %v1342_v45 = vpop.xlane.xlu1 %1341 }
 0x5c5   : > { %v1339_v61 = vpop.xlane.xlu0 %1338 }
 0x5c6   : > { %3328 = vrcp.f32 %v1339_v61 }
 0x5c7   : > { %3330 = vrcp.f32 %v1342_v45 }
 0x5c8   : > { %v1348_v1 = vpop.xlane.xlu1 %1347 }
 0x5c9   : > { %v1345_v2 = vpop.xlane.xlu0 %1344 }
 0x5ca   : > { %3332 = vrcp.f32 %v1345_v2 }
 0x5cb   : > { %v3325_v17 = vpop.eup %3324  ;;  %3334 = vrcp.f32 %v1348_v1 }
 0x5cc   : > { %v1356_v21 = vmul.f32 %v3325_v17, %v3311_v58  ;;  %v1354_v16 = vpop.xlane.xlu1 %1353  ;;  %v3327_v59 = vpop.eup %3326  ;;  %v3999_v17 = vld [vmem:[%s4206_s2] sm:$0xff] }
 0x5cd   : > { %v1351_v15 = vpop.xlane.xlu0 %1350  ;;  %v1358_v58 = vmul.f32 %v3327_v59, %v3872_v41 }
 0x5ce   : > { %3063 = vmatprep.mubr.msk.f32.mxu1 %vm757_vm4, %v1356_v21  ;;  %3336 = vrcp.f32 %v1351_v15  ;;  %v4005_v15 = vld [vmem:[%s4206_s2 + $0x10] sm:$0xff] }
 0x5cf   : > { %3338 = vrcp.f32 %v1354_v16  ;;  %v4011_v16 = vld [vmem:[%s4206_s2 + $0x28] sm:$0xff] }
 0x5d0   : > { %v3329_v0 = vpop.eup %3328  ;;  %v1664_v5 = vpop.permute.xlu1 %1663 }
 0x5d1   : > { %v3263_v54 = vpop.permute.xlu0 %3262  ;;  %v3331_v14 = vpop.eup %3330  ;;  %v1360_v62 = vmul.f32 %v3329_v0, %v3879_v35  ;;  %v4017_v0 = vld [vmem:[%s4206_s2 + $0x20] sm:$0xff] }
 0x5d2   : > { %v3265_v31 = vunpack.i.h.bf16 %v3263_v54  ;;  %v3264_v11 = vunpack.i.l.bf16 %v3263_v54  ;;  %v1362_v8 = vmul.f32 %v3331_v14, %v3877_v30  ;;  %v2759_v14 = vld [vmem:[%s3734_s28 + $0x58] sm:$0xff] }
 0x5d4   : > { %v3207_v6 = vpack.c.bf16 %v3265_v31, %v3264_v11  ;;  %v3333_v33 = vpop.eup %3332 }
 0x5d5   : > { %v3335_v29 = vpop.eup %3334  ;;  %v1364_v39 = vmul.f32 %v3333_v33, %v3887_v19  ;;  %v1666_v19 = vpop.permute.xlu1 %1665  ;;  %v2758_v33 = vld [vmem:[%s3734_s28 + $0x50] sm:$0xff] }
 0x5d6   : > { %3208 = vmatprep.subr.bf16.mxu1 %v3207_v6  ;;  %v1366_v41 = vmul.f32 %v3335_v29, %v3885_v7  ;;  %v1668_v22 = vpop.permute.xlu0 %1667 }
 0x5d7   : > { %3210 = vmatpush3.bf16.msra.mxu1 %v3207_v6 }
 0x5d8   : > { %3219 = vmatprep.subr.msk.bf16.mxu1 %vm3578_vm3, %v3720_v4  ;;  %v3337_v60 = vpop.eup %3336 }
 0x5d9   : > { %v3339_v35 = vpop.eup %3338  ;;  %v1368_v30 = vmul.f32 %v3337_v60, %v3895_v9 }
 0x5da   : > { %3064 = vmatmul.mubr.msk.f32.vlgmr.msra.gmra.mrb[20].mxu1 %vm757_vm4, %v1358_v58  ;;  %v1370_v63 = vmul.f32 %v3339_v35, %v3893_v34  ;;  %v1672_v7 = vpop.permute.xlu0 %1671  ;;  %v4031_v35 = vld [vmem:[%s4206_s2 + $0x30] sm:$0xff] }
 0x5db   : > { %3066 = vmatprep.mubr.msk.f32.mxu1 %vm757_vm4, %v1360_v62 }
 0x5de   : > { %3067 = vmatmul.mubr.msk.f32.gmra.mrb[22].mxu1 %vm757_vm4, %v1362_v8  ;;  %v1676_v34 = vpop.permute.xlu0 %1675 }
 0x5df   : > { %3069 = vmatprep.mubr.msk.f32.mxu1 %vm757_vm4, %v1364_v39 }
 0x5e0   : > { %3222 = vmatpush3.bf16.xpose.msk.msra.mxu1 %vm3578_vm3, %v3720_v4  ;;  %v1670_v4 = vpop.permute.xlu1 %1669 }
 0x5e1   : > { %3229 = vmatprep.subr.msk.bf16.mxu1 %vm3578_vm3, %v3726_v10 }
 0x5e2   : > { %3070 = vmatmul.mubr.msk.f32.gmra.mrb[24].mxu1 %vm757_vm4, %v1366_v41 }
 0x5e3   : > { %3072 = vmatprep.mubr.msk.f32.mxu1 %vm757_vm4, %v1368_v30 }
 0x5e4   : > { %v1674_v9 = vpop.permute.xlu1 %1673 }
 0x5e6   : > { %3073 = vmatmul.mubr.msk.f32.gmra.mrb[26].mxu1 %vm757_vm4, %v1370_v63 }
 0x5e7   : > { %3095 = vmatprep.mubr.msk.f32.mxu1 %vm460_vm2, %v1664_v5  ;;  %v4025_v5 = vld [vmem:[%s4206_s2 + $0x38] sm:$0xff] }
 0x5e8   : > { %v1678_v13 = vpop.permute.xlu1 %1677 }
 0x5ea   : > { %3096 = vmatmul.mubr.msk.f32.vlgmr.msra.gmra.mrb[28].mxu1 %vm460_vm2, %v1666_v19 }
 0x5eb   : > { %3232 = vmatpush3.bf16.xpose.msk.msra.mxu1 %vm3578_vm3, %v3726_v10  ;;  %3098 = vmatprep.mubr.msk.f32.mxu1 %vm460_vm2, %v1668_v22 }
 0x5ee   : > { %3099 = vmatmul.mubr.msk.f32.gmra.mrb[30].mxu1 %vm460_vm2, %v1670_v4 }
 0x5ef   : > { %3101 = vmatprep.mubr.msk.f32.mxu1 %vm460_vm2, %v1672_v7  ;;  %v2757_v7 = vld [vmem:[%s3734_s28 + $0x48] sm:$0xff] }
 0x5f2   : > { %3102 = vmatmul.mubr.msk.f32.gmra.mrb[32].mxu1 %vm460_vm2, %v1674_v9 }
 0x5f3   : > { %3104 = vmatprep.mubr.msk.f32.mxu1 %vm460_vm2, %v1676_v34 }
 0x5f6   : > { %3105 = vmatmul.mubr.msk.f32.gmra.mrb[34].mxu1 %vm460_vm2, %v1678_v13 }
 0x5f7   : > { %3127 = vmatprep.mubr.msk.f32.mxu1 %vm460_vm2, %v3404_v55  ;;  %v2756_v55 = vld [vmem:[%s3734_s28 + $0x40] sm:$0xff] }
 0x5fa   : > { %3128 = vmatmul.mubr.msk.f32.vlgmr.msra.gmra.mrb[36].mxu1 %vm460_vm2, %v3627_v46  ;;  %v3081_v46 = vpop.f32.mrb[28].mxu0 }
 0x5fb   : > { %3130 = vmatprep.mubr.msk.f32.mxu1 %vm460_vm2, %v3653_v53  ;;  %v1608_v53 = vpop.f32.mrb[29].mxu0  ;;  %v1648_v41 = vmul.f32 %v3081_v46, %v2759_v14 }
 0x5fc   : > { %v3084_v18 = vpop.f32.mrb[30].mxu0  ;;  %v1647_v19 = vmul.f32 %v2758_v33, %v1608_v53 }
 0x5fd   : > { %v1618_v23 = vpop.f32.mrb[31].mxu0  ;;  %v1650_v34 = vmul.f32 %v3084_v18, %v2759_v14 }
 0x5fe   : > { %3131 = vmatmul.mubr.msk.f32.gmra.mrb[38].mxu1 %vm460_vm2, %v3665_v56  ;;  %v3087_v56 = vpop.f32.mrb[32].mxu0  ;;  %v1649_v46 = vmul.f32 %v2758_v33, %v1618_v23 }
 0x5ff   : > { %3133 = vmatprep.mubr.msk.f32.mxu1 %vm460_vm2, %v3405_v3  ;;  %v1628_v42 = vpop.f32.mrb[33].mxu0 }
 0x600   : > { %v3090_v37 = vpop.f32.mrb[34].mxu0 }
 0x601   : > { %v1638_v38 = vpop.f32.mrb[35].mxu0 }
 0x602   : > { %3134 = vmatmul.mubr.msk.f32.gmra.mrb[40].mxu1 %vm460_vm2, %v3634_v48  ;;  %v3987_v48 = vld [vmem:[%s4206_s2 + $0x8] sm:$0xff] }
 0x603   : > { %3136 = vmatprep.mubr.msk.f32.mxu1 %vm460_vm2, %v3642_v50 }
 0x606   : > { %3137 = vmatmul.mubr.msk.f32.gmra.mrb[42].mxu1 %vm460_vm2, %v3674_v57  ;;  %v3993_v57 = vld [vmem:[%s4206_s2 + $0x18] sm:$0xff] }
 0x6ad   : > { %v3065_v49 = vpop.f32.mrb[20].mxu1 }
 0x6ae   : > { %v1467_v24 = vpop.f32.mrb[21].mxu1  ;;  %v1507_v50 = vmul.f32 %v3987_v48, %v3065_v49 }
 0x6af   : > { %v1506_v21 = vmul.f32 %v3999_v17, %v1467_v24 }
 0x6b1   : > { %v3068_v61 = vpop.f32.mrb[22].mxu1 }
 0x6b2   : > { %v1509_v45 = vmul.f32 %v3993_v57, %v3068_v61  ;;  %v1477_v2 = vpop.f32.mrb[23].mxu1 }
 0x6b3   : > { %v1508_v1 = vmul.f32 %v4005_v15, %v1477_v2 }
 0x6b4   : > { %v1515_v54 = vadd.f32 %v1509_v45, %v1507_v50  ;;  %v1652_v45 = vmul.f32 %v3087_v56, %v2759_v14 }
 0x6b5   : > { %v1514_v31 = vadd.f32 %v1508_v1, %v1506_v21  ;;  %v3071_v11 = vpop.f32.mrb[24].mxu1  ;;  %v1651_v1 = vmul.f32 %v2758_v33, %v1628_v42 }
 0x6b6   : > { %v1511_v6 = vmul.f32 %v4011_v16, %v3071_v11  ;;  %v1487_v59 = vpop.f32.mrb[25].mxu1 }
 0x6b7   : > { %v1510_v58 = vmul.f32 %v4017_v0, %v1487_v59  ;;  %v1654_v59 = vmul.f32 %v3090_v37, %v2759_v14 }
 0x6b8   : > { %v1517_v62 = vadd.f32 %v1515_v54, %v1511_v6 }
 0x6b9   : > { %v1516_v8 = vadd.f32 %v1514_v31, %v1510_v58  ;;  %v3074_v29 = vpop.f32.mrb[26].mxu1  ;;  %v1653_v58 = vmul.f32 %v2758_v33, %v1638_v38 }
 0x6ba   : > { %v1513_v39 = vmul.f32 %v4025_v5, %v3074_v29  ;;  %v1497_v60 = vpop.f32.mrb[27].mxu1 }
 0x6bb   : > { %v1512_v30 = vmul.f32 %v4031_v35, %v1497_v60 }
 0x6bc   : > { %v4034_v63 = vadd.f32 %v1517_v62, %v1513_v39 }
 0x6bd   : > { %v4036_v22 = vadd.f32 %v1516_v8, %v1512_v30  ;;  %v3097_v4 = vpop.f32.mrb[28].mxu1 }
 0x6be   : > { %v1767_v9 = vadd.f32 %v3097_v4, %v1648_v41  ;;  %v1761_v13 = vpop.f32.mrb[29].mxu1 }
 0x6bf   : > { %v1762_v3 = vadd.f32 %v1761_v13, %v1647_v19 }
 0x6c0   : > { %v1801_v49 = vadd.f32 %v2757_v7, %v1767_v9  ;;  %v4217_v9 = vpack.i.bf16 %v3617_v43, %v3620_v44 }
 0x6c1   : > { %v3100_v24 = vpop.f32.mrb[30].mxu1  ;;  %v1800_v61 = vadd.f32 %v2756_v55, %v1762_v3 }
 0x6c2   : > { %v1777_v50 = vadd.f32 %v3100_v24, %v1650_v34  ;;  %v1771_v2 = vpop.f32.mrb[31].mxu1  ;;  %v1811_v53 = vsel %vm757_vm4, %v1801_v49, -inf }
 0x6c3   : > { %v1772_v21 = vadd.f32 %v1771_v2, %v1649_v46  ;;  %1812 = vmax.xlane.f32.xlu1 %v1811_v53  ;;  %v1808_v54 = vsel %vm757_vm4, %v1800_v61, -inf }
 0x6c4   : > { %1809 = vmax.xlane.f32.xlu0 %v1808_v54  ;;  %v1803_v8 = vadd.f32 %v2757_v7, %v1777_v50 }
 0x6c5   : > { %v3103_v31 = vpop.f32.mrb[32].mxu1  ;;  %v1802_v18 = vadd.f32 %v2756_v55, %v1772_v21 }
 0x6c6   : > { %v1787_v11 = vadd.f32 %v3103_v31, %v1652_v45  ;;  %v1781_v6 = vpop.f32.mrb[33].mxu1  ;;  %v1817_v30 = vsel %vm757_vm4, %v1803_v8, -inf }
 0x6c7   : > { %v1782_v23 = vadd.f32 %v1781_v6, %v1651_v1  ;;  %v1814_v62 = vsel %vm757_vm4, %v1802_v18, -inf }
 0x6c8   : > { %1815 = vmax.xlane.f32.xlu0 %v1814_v62  ;;  %v1805_v19 = vadd.f32 %v2757_v7, %v1787_v11 }
 0x6c9   : > { %v3106_v56 = vpop.f32.mrb[34].mxu1  ;;  %v1804_v29 = vadd.f32 %v2756_v55, %v1782_v23 }
 0x6ca   : > { %v1797_v39 = vadd.f32 %v3106_v56, %v1654_v59  ;;  %v1791_v60 = vpop.f32.mrb[35].mxu1  ;;  %v1823_v38 = vsel %vm757_vm4, %v1805_v19, -inf }
 0x6cb   : > { %v1792_v42 = vadd.f32 %v1791_v60, %v1653_v58  ;;  %v1820_v41 = vsel %vm757_vm4, %v1804_v29, -inf }
 0x6cc   : > { %1821 = vmax.xlane.f32.xlu1 %v1820_v41  ;;  %1818 = vmax.xlane.f32.xlu0 %v1817_v30  ;;  %v1807_v14 = vadd.f32 %v2757_v7, %v1797_v39 }
 0x6cd   : > { %v4045_v4 = vadd.f32 %v2756_v55, %v1792_v42 }
 0x6ce   : > { %v1829_v33 = vsel %vm757_vm4, %v1807_v14, -inf }
 0x6cf   : > { %v1826_v37 = vsel %vm757_vm4, %v4045_v4, -inf }
 0x6d0   : > { %1827 = vmax.xlane.f32.xlu1 %v1826_v37  ;;  %1824 = vmax.xlane.f32.xlu0 %v1823_v38 }
 0x6d4   : > { %1830 = vmax.xlane.f32.xlu0 %v1829_v33 }
 0x6e1   : > { %3267 = vrot.lane.b32.xlu1 %v4217_v9, %s3424_s29 }
 0x750   : > { %v1813_v34 = vpop.xlane.xlu1 %1812 }
 0x751   : > { %v1833_v13 = vsub.f32 %v1801_v49, %v1813_v34  ;;  %v1810_v55 = vpop.xlane.xlu0 %1809  ;;  %v2054_v34 = vmul.f32 %v3646_v52, %v3568_v28  ;;  %v2060_v28 = vmul.f32 %v3646_v52, %v3629_v47 }
 0x752   : > { %v1832_v3 = vsub.f32 %v1800_v61, %v1810_v55 }
 0x753   : > { %v1842_v46 = vmul.f32 1.442695, %v1833_v13  ;;  %v4218_v13 = vld [vmem:[#allocation2_spill] sm:$0xff] }
 0x754   : > { %v1840_v24 = vmul.f32 1.442695, %v1832_v3  ;;  %v2053_v55 = vmul.f32 %v3564_v26, %v4218_v13 }
 0x755   : > { %3340 = vpow2.f32 %v1842_v46  ;;  %v1816_v50 = vpop.xlane.xlu0 %1815  ;;  %v2056_v46 = vmul.f32 %v3646_v52, %v3566_v27  ;;  %v2055_v27 = vmul.f32 %v3562_v25, %v4218_v13 }
 0x756   : > { %3342 = vpow2.f32 %v1840_v24  ;;  %v1834_v7 = vsub.f32 %v1802_v18, %v1816_v50  ;;  %v2058_v50 = vmul.f32 %v3646_v52, %v3589_v36  ;;  %v2057_v36 = vmul.f32 %v3604_v40, %v4218_v13 }
 0x758   : > { %v1844_v45 = vmul.f32 1.442695, %v1834_v7  ;;  %v2059_v7 = vmul.f32 %v3644_v51, %v4218_v13 }
 0x759   : > { %v1822_v2 = vpop.xlane.xlu1 %1821  ;;  %v1819_v53 = vpop.xlane.xlu0 %1818 }
 0x75a   : > { %3344 = vpow2.f32 %v1844_v45  ;;  %v1836_v21 = vsub.f32 %v1804_v29, %v1822_v2  ;;  %v1835_v1 = vsub.f32 %v1803_v8, %v1819_v53 }
 0x75c   : > { %v1848_v54 = vmul.f32 1.442695, %v1836_v21  ;;  %v1846_v31 = vmul.f32 1.442695, %v1835_v1 }
 0x75d   : > { %v1828_v43 = vpop.xlane.xlu1 %1827  ;;  %v1825_v44 = vpop.xlane.xlu0 %1824 }
 0x75e   : > { %3346 = vpow2.f32 %v1848_v54  ;;  %v1837_v49 = vsub.f32 %v1805_v19, %v1825_v44  ;;  %v1838_v3 = vsub.f32 %v4045_v4, %v1828_v43 }
 0x75f   : > { %v4055_v11 = vpop.eup %3340  ;;  %3348 = vpow2.f32 %v1846_v31 }
 0x760   : > { %v4057_v61 = vpop.eup %3342  ;;  %v1850_v6 = vmul.f32 1.442695, %v1837_v49  ;;  %v1859_v18 = vsel %vm757_vm4, %v4055_v11, 0.0  ;;  %v1852_v24 = vmul.f32 1.442695, %v1838_v3 }
 0x761   : > { %v3268_v59 = vpop.permute.xlu1 %3267  ;;  %1860 = vadd.xlane.f32.xlu0 %v1859_v18  ;;  %v1831_v23 = vpop.xlane.xlu0 %1830  ;;  %v1856_v58 = vsel %vm757_vm4, %v4057_v61, 0.0 }
 0x762   : > { %v3270_v62 = vunpack.i.h.bf16 %v3268_v59  ;;  %v3269_v8 = vunpack.i.l.bf16 %v3268_v59  ;;  %v1839_v56 = vsub.f32 %v1807_v14, %v1831_v23  ;;  %1857 = vadd.xlane.f32.xlu1 %v1856_v58  ;;  %3350 = vpow2.f32 %v1850_v6 }
 0x764   : > { %v4063_v29 = vpop.eup %3344  ;;  %v3223_v39 = vpack.c.bf16 %v3270_v62, %v3269_v8  ;;  %v1854_v60 = vmul.f32 1.442695, %v1839_v56 }
 0x765   : > { %v1862_v42 = vsel %vm757_vm4, %v4063_v29, 0.0 }
 0x766   : > { %3352 = vpow2.f32 %v1854_v60  ;;  %3224 = vmatprep.subr.bf16.mxu0 %v3223_v39  ;;  %1863 = vadd.xlane.f32.xlu1 %v1862_v42 }
 0x767   : > { %3226 = vmatpush3.bf16.msra.mxu0 %v3223_v39  ;;  %3354 = vpow2.f32 %v1852_v24 }
 0x768   : > { %v3347_v41 = vpop.eup %3346  ;;  %3235 = vmatprep.subr.msk.bf16.mxu0 %vm3578_vm3, %v3726_v10 }
 0x769   : > { %v3349_v30 = vpop.eup %3348  ;;  %v1868_v19 = vsel %vm757_vm4, %v3347_v41, 0.0 }
 0x76a   : > { %1869 = vadd.xlane.f32.xlu1 %v1868_v19  ;;  %v1865_v37 = vsel %vm757_vm4, %v3349_v30, 0.0  ;;  %v3129_v19 = vpop.f32.mrb[36].mxu1 }
 0x76b   : > { %1866 = vadd.xlane.f32.xlu0 %v1865_v37  ;;  %v2133_v37 = vpop.f32.mrb[37].mxu1 }
 0x76c   : > { %v3351_v38 = vpop.eup %3350 }
 0x76d   : > { %v1871_v14 = vsel %vm757_vm4, %v3351_v38, 0.0 }
 0x76f   : > { %1872 = vadd.xlane.f32.xlu0 %v1871_v14 }
 0x770   : > { %v4073_v33 = vpop.eup %3352 }
 0x771   : > { %v1877_v9 = vsel %vm757_vm4, %v4073_v33, 0.0  ;;  %v3355_v26 = vpop.eup %3354 }
 0x772   : > { %v1874_v4 = vsel %vm757_vm4, %v3355_v26, 0.0 }
 0x773   : > { %1878 = vadd.xlane.f32.xlu0 %v1877_v9 }
 0x77b   : > { %2190 = vrot.lane.b32.xlu1 %v2054_v34, %s3423_s9 }
 0x789   : > { %2188 = vrot.lane.b32.xlu0 %v2053_v55, %s3423_s9 }
 0x78d   : > { %2194 = vrot.lane.b32.xlu0 %v2056_v46, %s3423_s9 }
 0x791   : > { %2198 = vrot.lane.b32.xlu0 %v2058_v50, %s3423_s9 }
 0x795   : > { %2202 = vrot.lane.b32.xlu0 %v2060_v28, %s3423_s9 }
 0x79f   : > { %1875 = vadd.xlane.f32.xlu1 %v1874_v4 }
 0x7b0   : > { %2192 = vrot.lane.b32.xlu1 %v2055_v27, %s3423_s9 }
 0x7b4   : > { %2196 = vrot.lane.b32.xlu1 %v2057_v36, %s3423_s9 }
 0x7b8   : > { %2200 = vrot.lane.b32.xlu1 %v2059_v7, %s3423_s9 }
 0x7ee   : > { %v1861_v47 = vpop.xlane.xlu0 %1860 }
 0x7ef   : > { %3356 = vrcp.f32 %v1861_v47  ;;  %v1858_v45 = vpop.xlane.xlu1 %1857 }
 0x7f0   : > { %3358 = vrcp.f32 %v1858_v45 }
 0x7f3   : > { %v1864_v2 = vpop.xlane.xlu1 %1863 }
 0x7f4   : > { %3360 = vrcp.f32 %v1864_v2 }
 0x7f7   : > { %v1870_v53 = vpop.xlane.xlu1 %1869 }
 0x7f8   : > { %3362 = vrcp.f32 %v1870_v53  ;;  %v1867_v25 = vpop.xlane.xlu0 %1866 }
 0x7f9   : > { %v3357_v21 = vpop.eup %3356  ;;  %3364 = vrcp.f32 %v1867_v25 }
 0x7fa   : > { %v3359_v1 = vpop.eup %3358  ;;  %v1883_v54 = vmul.f32 %v3357_v21, %v4055_v11 }
 0x7fb   : > { %v1881_v40 = vmul.f32 %v3359_v1, %v4057_v61  ;;  %v2191_v59 = vpop.permute.xlu1 %2190  ;;  %v2791_v1 = vld [vmem:[%s3734_s28 + $0x78] sm:$0xff] }
 0x7fc   : > { %v1873_v31 = vpop.xlane.xlu0 %1872 }
 0x7fd   : > { %3366 = vrcp.f32 %v1873_v31  ;;  %3111 = vmatprep.mubr.msk.f32.mxu0 %vm757_vm4, %v1881_v40  ;;  %v2790_v40 = vld [vmem:[%s3734_s28 + $0x70] sm:$0xff] }
 0x7fe   : > { %v3361_v51 = vpop.eup %3360  ;;  %3112 = vmatmul.mubr.msk.f32.vlgmr.msra.gmra.mrb[36].mxu0 %vm757_vm4, %v1883_v54 }
 0x7ff   : > { %3238 = vmatpush3.bf16.xpose.msk.msra.mxu0 %vm3578_vm3, %v3726_v10  ;;  %v1885_v43 = vmul.f32 %v3361_v51, %v4063_v29 }
 0x800   : > { %v1879_v23 = vpop.xlane.xlu0 %1878 }
 0x801   : > { %3114 = vmatprep.mubr.msk.f32.mxu0 %vm757_vm4, %v1885_v43  ;;  %3368 = vrcp.f32 %v1879_v23  ;;  %v2173_v43 = vmul.f32 %v3129_v19, %v2791_v1 }
 0x802   : > { %v3363_v44 = vpop.eup %3362 }
 0x803   : > { %v3365_v49 = vpop.eup %3364  ;;  %v1889_v61 = vmul.f32 %v3363_v44, %v3347_v41 }
 0x804   : > { %v1887_v6 = vmul.f32 %v3365_v49, %v3349_v30  ;;  %v2189_v62 = vpop.permute.xlu0 %2188  ;;  %v2172_v49 = vmul.f32 %v2790_v40, %v2133_v37 }
 0x806   : > { %3115 = vmatmul.mubr.msk.f32.gmra.mrb[38].mxu0 %vm757_vm4, %v1887_v6 }
 0x807   : > { %v3367_v11 = vpop.eup %3366  ;;  %3117 = vmatprep.mubr.msk.f32.mxu0 %vm757_vm4, %v1889_v61 }
 0x808   : > { %v1891_v18 = vmul.f32 %v3367_v11, %v3351_v38  ;;  %v2195_v39 = vpop.permute.xlu0 %2194  ;;  %v3132_v38 = vpop.f32.mrb[38].mxu1 }
 0x809   : > { %v2143_v14 = vpop.f32.mrb[39].mxu1  ;;  %v2175_v23 = vmul.f32 %v3132_v38, %v2791_v1 }
 0x80a   : > { %3118 = vmatmul.mubr.msk.f32.gmra.mrb[40].mxu0 %vm757_vm4, %v1891_v18  ;;  %v2789_v18 = vld [vmem:[%s3734_s28 + $0x68] sm:$0xff] }
 0x80b   : > { %v3369_v10 = vpop.eup %3368 }
 0x80c   : > { %v1895_v56 = vmul.f32 %v3369_v10, %v4073_v33  ;;  %v2199_v42 = vpop.permute.xlu0 %2198  ;;  %v3135_v33 = vpop.f32.mrb[40].mxu1  ;;  %v2788_v10 = vld [vmem:[%s3734_s28 + $0x60] sm:$0xff] }
 0x80d   : > { %v2153_v9 = vpop.f32.mrb[41].mxu1 }
 0x80e   : > { %v3138_v34 = vpop.f32.mrb[42].mxu1  ;;  %v2176_v19 = vmul.f32 %v2790_v40, %v2153_v9 }
 0x80f   : > { %v2163_v55 = vpop.f32.mrb[43].mxu1 }
 0x810   : > { %v2203_v30 = vpop.permute.xlu0 %2202 }
 0x82c   : > { %v1876_v32 = vpop.xlane.xlu1 %1875 }
 0x82d   : > { %3370 = vrcp.f32 %v1876_v32 }
 0x830   : > { %v2193_v29 = vpop.permute.xlu1 %2192 }
 0x834   : > { %v2197_v60 = vpop.permute.xlu1 %2196 }
 0x837   : > { %v3371_v58 = vpop.eup %3370 }
 0x838   : > { %v1893_v8 = vmul.f32 %v3371_v58, %v3355_v26  ;;  %v2201_v41 = vpop.permute.xlu1 %2200 }
 0x83a   : > { %3120 = vmatprep.mubr.msk.f32.mxu0 %vm757_vm4, %v1893_v8 }
 0x83b   : > { %3121 = vmatmul.mubr.msk.f32.gmra.mrb[42].mxu0 %vm757_vm4, %v1895_v56 }
 0x83c   : > { %3143 = vmatprep.mubr.msk.f32.mxu0 %vm460_vm2, %v2189_v62  ;;  %v2174_v62 = vmul.f32 %v2790_v40, %v2143_v14 }
 0x83f   : > { %3144 = vmatmul.mubr.msk.f32.vlgmr.msra.gmra.mrb[44].mxu0 %vm460_vm2, %v2191_v59 }
 0x840   : > { %3146 = vmatprep.mubr.msk.f32.mxu0 %vm460_vm2, %v2193_v29 }
 0x843   : > { %3147 = vmatmul.mubr.msk.f32.gmra.mrb[46].mxu0 %vm460_vm2, %v2195_v39 }
 0x844   : > { %3149 = vmatprep.mubr.msk.f32.mxu0 %vm460_vm2, %v2197_v60  ;;  %v2177_v60 = vmul.f32 %v3135_v33, %v2791_v1 }
 0x847   : > { %3150 = vmatmul.mubr.msk.f32.gmra.mrb[48].mxu0 %vm460_vm2, %v2199_v42 }
 0x848   : > { %3152 = vmatprep.mubr.msk.f32.mxu0 %vm460_vm2, %v2201_v41 }
 0x84b   : > { %3153 = vmatmul.mubr.msk.f32.gmra.mrb[50].mxu0 %vm460_vm2, %v2203_v30 }
 0x8d1   : > { %v3113_v3 = vpop.f32.mrb[36].mxu0 }
 0x8d2   : > { %v1992_v46 = vpop.f32.mrb[37].mxu0  ;;  %v2032_v50 = vmul.f32 %v3987_v48, %v3113_v3 }
 0x8d3   : > { %v2031_v4 = vmul.f32 %v3999_v17, %v1992_v46 }
 0x8d9   : > { %v3116_v24 = vpop.f32.mrb[38].mxu0 }
 0x8da   : > { %v2034_v28 = vmul.f32 %v3993_v57, %v3116_v24  ;;  %v2002_v26 = vpop.f32.mrb[39].mxu0 }
 0x8db   : > { %v2033_v27 = vmul.f32 %v4005_v15, %v2002_v26 }
 0x8dc   : > { %v2040_v36 = vadd.f32 %v2034_v28, %v2032_v50  ;;  %v2179_v50 = vmul.f32 %v3138_v34, %v2791_v1 }
 0x8dd   : > { %v2039_v7 = vadd.f32 %v2033_v27, %v2031_v4  ;;  %v3119_v47 = vpop.f32.mrb[40].mxu0  ;;  %v2178_v4 = vmul.f32 %v2790_v40, %v2163_v55 }
 0x8de   : > { %v2036_v45 = vmul.f32 %v4011_v16, %v3119_v47  ;;  %v2012_v2 = vpop.f32.mrb[41].mxu0 }
 0x8df   : > { %v2035_v53 = vmul.f32 %v4017_v0, %v2012_v2 }
 0x8e0   : > { %v2042_v25 = vadd.f32 %v2040_v36, %v2036_v45 }
 0x8e1   : > { %v2041_v21 = vadd.f32 %v2039_v7, %v2035_v53 }
 0x90e   : > { %v3122_v54 = vpop.f32.mrb[42].mxu0 }
 0x90f   : > { %v2038_v31 = vmul.f32 %v4025_v5, %v3122_v54  ;;  %v2022_v51 = vpop.f32.mrb[43].mxu0 }
 0x910   : > { %v2037_v44 = vmul.f32 %v4031_v35, %v2022_v51 }
 0x911   : > { %v4136_v61 = vadd.f32 %v2042_v25, %v2038_v31 }
 0x912   : > { %v4138_v6 = vadd.f32 %v2041_v21, %v2037_v44  ;;  %v3145_v11 = vpop.f32.mrb[44].mxu0 }
 0x913   : > { %v2292_v59 = vadd.f32 %v3145_v11, %v2173_v43  ;;  %v2286_v32 = vpop.f32.mrb[45].mxu0 }
 0x914   : > { %v2287_v58 = vadd.f32 %v2286_v32, %v2172_v49 }
 0x915   : > { %v2326_v8 = vadd.f32 %v2789_v18, %v2292_v59 }
 0x916   : > { %v3148_v56 = vpop.f32.mrb[46].mxu0  ;;  %v2325_v29 = vadd.f32 %v2788_v10, %v2287_v58 }
 0x917   : > { %v2302_v39 = vadd.f32 %v3148_v56, %v2175_v23  ;;  %v2296_v42 = vpop.f32.mrb[47].mxu0  ;;  %v2336_v41 = vsel %vm757_vm4, %v2326_v8, -inf }
 0x918   : > { %v2297_v30 = vadd.f32 %v2296_v42, %v2174_v62  ;;  %2337 = vmax.xlane.f32.xlu0 %v2336_v41  ;;  %v2333_v37 = vsel %vm757_vm4, %v2325_v29, -inf }
 0x919   : > { %2334 = vmax.xlane.f32.xlu1 %v2333_v37  ;;  %v2328_v3 = vadd.f32 %v2789_v18, %v2302_v39 }
 0x91a   : > { %v3151_v38 = vpop.f32.mrb[48].mxu0  ;;  %v2327_v46 = vadd.f32 %v2788_v10, %v2297_v30 }
 0x91b   : > { %v2312_v24 = vadd.f32 %v3151_v38, %v2177_v60  ;;  %v2306_v14 = vpop.f32.mrb[49].mxu0  ;;  %v2342_v28 = vsel %vm757_vm4, %v2328_v3, -inf }
 0x91c   : > { %v2307_v26 = vadd.f32 %v2306_v14, %v2176_v19  ;;  %v2339_v33 = vsel %vm757_vm4, %v2327_v46, -inf }
 0x91d   : > { %2343 = vmax.xlane.f32.xlu1 %v2342_v28  ;;  %2340 = vmax.xlane.f32.xlu0 %v2339_v33  ;;  %v2330_v27 = vadd.f32 %v2789_v18, %v2312_v24 }
 0x91e   : > { %v3154_v9 = vpop.f32.mrb[50].mxu0  ;;  %v2329_v36 = vadd.f32 %v2788_v10, %v2307_v26 }
 0x91f   : > { %v2322_v7 = vadd.f32 %v3154_v9, %v2179_v50  ;;  %v2316_v47 = vpop.f32.mrb[51].mxu0  ;;  %v2348_v45 = vsel %vm757_vm4, %v2330_v27, -inf }
 0x920   : > { %v2317_v2 = vadd.f32 %v2316_v47, %v2178_v4  ;;  %v2345_v53 = vsel %vm757_vm4, %v2329_v36, -inf  ;;  %v1520_v47 = vmax.f32 %v4036_v22, 0.0 }
 0x921   : > { %2349 = vmax.xlane.f32.xlu1 %v2348_v45  ;;  %2346 = vmax.xlane.f32.xlu0 %v2345_v53  ;;  %v2332_v34 = vadd.f32 %v2789_v18, %v2322_v7  ;;  %v1521_v45 = vmax.f32 %v4034_v63, 0.0  ;;  %v4219_v53 = vpack.i.bf16 %v3646_v52, %v4218_v13 }
 0x922   : > { %v2331_v25 = vadd.f32 %v2788_v10, %v2317_v2  ;;  %v2046_v2 = vmax.f32 %v4136_v61, 0.0 }
 0x923   : > { %v2354_v55 = vsel %vm757_vm4, %v2332_v34, -inf }
 0x924   : > { %v2351_v21 = vsel %vm757_vm4, %v2331_v25, -inf }
 0x925   : > { %2355 = vmax.xlane.f32.xlu1 %v2354_v55  ;;  %2352 = vmax.xlane.f32.xlu0 %v2351_v21 }
 0x9a5   : > { %v2338_v1 = vpop.xlane.xlu0 %2337 }
 0x9a6   : > { %v2358_v40 = vsub.f32 %v2326_v8, %v2338_v1  ;;  %v2335_v54 = vpop.xlane.xlu1 %2334 }
 0x9a7   : > { %v2357_v31 = vsub.f32 %v2325_v29, %v2335_v54 }
 0x9a8   : > { %v2367_v51 = vmul.f32 1.442695, %v2358_v40 }
 0x9a9   : > { %v2365_v43 = vmul.f32 1.442695, %v2357_v31 }
 0x9aa   : > { %3372 = vpow2.f32 %v2367_v51  ;;  %v2344_v44 = vpop.xlane.xlu1 %2343  ;;  %v2341_v49 = vpop.xlane.xlu0 %2340 }
 0x9ab   : > { %3374 = vpow2.f32 %v2365_v43  ;;  %v2360_v11 = vsub.f32 %v2328_v3, %v2344_v44  ;;  %v2359_v59 = vsub.f32 %v2327_v46, %v2341_v49 }
 0x9ad   : > { %v2371_v18 = vmul.f32 1.442695, %v2360_v11  ;;  %v2369_v23 = vmul.f32 1.442695, %v2359_v59 }
 0x9ae   : > { %v2350_v32 = vpop.xlane.xlu1 %2349  ;;  %v2347_v10 = vpop.xlane.xlu0 %2346 }
 0x9af   : > { %3376 = vpow2.f32 %v2371_v18  ;;  %v2362_v58 = vsub.f32 %v2330_v27, %v2350_v32  ;;  %v2361_v62 = vsub.f32 %v2329_v36, %v2347_v10 }
 0x9b0   : > { %3378 = vpow2.f32 %v2369_v23 }
 0x9b1   : > { %v2375_v56 = vmul.f32 1.442695, %v2362_v58  ;;  %v2373_v8 = vmul.f32 1.442695, %v2361_v62 }
 0x9b2   : > { %v2356_v39 = vpop.xlane.xlu1 %2355  ;;  %v2353_v29 = vpop.xlane.xlu0 %2352 }
 0x9b3   : > { %3380 = vpow2.f32 %v2375_v56  ;;  %v2364_v60 = vsub.f32 %v2332_v34, %v2356_v39  ;;  %v2363_v42 = vsub.f32 %v2331_v25, %v2353_v29  ;;  %v2045_v34 = vmax.f32 %v4138_v6, 0.0 }
 0x9b4   : > { %v4150_v41 = vpop.eup %3372  ;;  %3382 = vpow2.f32 %v2373_v8 }
 0x9b5   : > { %v3375_v30 = vpop.eup %3374  ;;  %v2379_v19 = vmul.f32 1.442695, %v2364_v60  ;;  %v2377_v37 = vmul.f32 1.442695, %v2363_v42  ;;  %v2384_v3 = vsel %vm757_vm4, %v4150_v41, 0.0 }
 0x9b6   : > { %2385 = vadd.xlane.f32.xlu1 %v2384_v3  ;;  %v2381_v38 = vsel %vm757_vm4, %v3375_v30, 0.0 }
 0x9b7   : > { %3384 = vpow2.f32 %v2379_v19  ;;  %2382 = vadd.xlane.f32.xlu0 %v2381_v38 }
 0x9b8   : > { %3386 = vpow2.f32 %v2377_v37 }
 0x9b9   : > { %v3377_v46 = vpop.eup %3376 }
 0x9ba   : > { %v3379_v24 = vpop.eup %3378  ;;  %v2390_v50 = vsel %vm757_vm4, %v3377_v46, 0.0 }
 0x9bb   : > { %2391 = vadd.xlane.f32.xlu1 %v2390_v50  ;;  %v2387_v14 = vsel %vm757_vm4, %v3379_v24, 0.0 }
 0x9bc   : > { %2388 = vadd.xlane.f32.xlu0 %v2387_v14 }
 0x9bd   : > { %v3381_v28 = vpop.eup %3380 }
 0x9be   : > { %v3383_v26 = vpop.eup %3382  ;;  %v2396_v4 = vsel %vm757_vm4, %v3381_v28, 0.0 }
 0x9bf   : > { %2397 = vadd.xlane.f32.xlu1 %v2396_v4  ;;  %v2393_v33 = vsel %vm757_vm4, %v3383_v26, 0.0 }
 0x9c0   : > { %2394 = vadd.xlane.f32.xlu0 %v2393_v33 }
 0x9c1   : > { %v3385_v27 = vpop.eup %3384 }
 0x9c2   : > { %v3387_v9 = vpop.eup %3386  ;;  %v2402_v36 = vsel %vm757_vm4, %v3385_v27, 0.0 }
 0x9c3   : > { %2403 = vadd.xlane.f32.xlu1 %v2402_v36  ;;  %v2399_v7 = vsel %vm757_vm4, %v3387_v9, 0.0 }
 0x9c4   : > { %2400 = vadd.xlane.f32.xlu0 %v2399_v7 }
 0x9d4   : > { %2574 = vrot.lane.b32.xlu1 %v1520_v47, %s3422_s6  ;;  %v996_v47 = vmax.f32 %v3858_v20, 0.0 }
 0x9d8   : > { %2576 = vrot.lane.b32.xlu1 %v1521_v45, %s3422_s6  ;;  %s2823_s6 = sshll.u32 %s4225_s19, 4  ;;  %v995_v45 = vmax.f32 %v3860_v12, 0.0 }
 0x9d9   : > { %s251_s7 = scalar_lea.vmem %s4209_s5, %s2823_s6 }
 0x9da   : > { %3272 = vrot.lane.b32.xlu0 %v4219_v53, %s3424_s29 }
 0x9dc   : > { %2584 = vrot.lane.b32.xlu1 %v2046_v2, %s3424_s29 }
 0x9de   : > { %2582 = vrot.lane.b32.xlu0 %v2045_v34, %s3424_s29 }
 0xa43   : > { %v2386_v25 = vpop.xlane.xlu1 %2385 }
 0xa44   : > { %v2383_v22 = vpop.xlane.xlu0 %2382 }
 0xa45   : > { %3388 = vrcp.f32 %v2383_v22 }
 0xa46   : > { %3390 = vrcp.f32 %v2386_v25 }
 0xa48   : > { %v2392_v63 = vpop.xlane.xlu1 %2391 }
 0xa49   : > { %v2389_v55 = vpop.xlane.xlu0 %2388 }
 0xa4a   : > { %3392 = vrcp.f32 %v2389_v55 }
 0xa4b   : > { %3394 = vrcp.f32 %v2392_v63 }
 0xa4c   : > { %v2398_v54 = vpop.xlane.xlu1 %2397 }
 0xa4d   : > { %v2395_v21 = vpop.xlane.xlu0 %2394 }
 0xa4e   : > { %3396 = vrcp.f32 %v2395_v21 }
 0xa4f   : > { %v3389_v1 = vpop.eup %3388  ;;  %3398 = vrcp.f32 %v2398_v54 }
 0xa50   : > { %v2406_v61 = vmul.f32 %v3389_v1, %v3375_v30  ;;  %v2404_v31 = vpop.xlane.xlu1 %2403  ;;  %v3391_v43 = vpop.eup %3390 }
 0xa51   : > { %v2401_v40 = vpop.xlane.xlu0 %2400  ;;  %v2408_v49 = vmul.f32 %v3391_v43, %v4150_v41 }
 0xa52   : > { %3159 = vmatprep.mubr.msk.f32.mxu1 %vm757_vm4, %v2406_v61  ;;  %3400 = vrcp.f32 %v2401_v40 }
 0xa53   : > { %3402 = vrcp.f32 %v2404_v31 }
 0xa54   : > { %v3393_v44 = vpop.eup %3392 }
 0xa55   : > { %v3273_v52 = vpop.permute.xlu0 %3272  ;;  %v3395_v11 = vpop.eup %3394  ;;  %v2410_v59 = vmul.f32 %v3393_v44, %v3379_v24 }
 0xa56   : > { %v3275_v13 = vunpack.i.h.bf16 %v3273_v52  ;;  %v3274_v6 = vunpack.i.l.bf16 %v3273_v52  ;;  %v2412_v23 = vmul.f32 %v3395_v11, %v3377_v46 }
 0xa58   : > { %v3239_v51 = vpack.c.bf16 %v3275_v13, %v3274_v6  ;;  %v3397_v18 = vpop.eup %3396 }
 0xa59   : > { %v3399_v32 = vpop.eup %3398  ;;  %v2414_v10 = vmul.f32 %v3397_v18, %v3383_v26 }
 0xa5a   : > { %3240 = vmatprep.subr.bf16.mxu1 %v3239_v51  ;;  %v2416_v62 = vmul.f32 %v3399_v32, %v3381_v28 }
 0xa5b   : > { %3242 = vmatpush3.bf16.msra.mxu1 %v3239_v51 }
 0xa5c   : > { %v3401_v58 = vpop.eup %3400 }
 0xa5d   : > { %v3403_v56 = vpop.eup %3402  ;;  %v2418_v8 = vmul.f32 %v3401_v58, %v3387_v9 }
 0xa5e   : > { %3160 = vmatmul.mubr.msk.f32.vlgmr.msra.gmra.mrb[44].mxu1 %vm757_vm4, %v2408_v49  ;;  %v2420_v39 = vmul.f32 %v3403_v56, %v3385_v27 }
 0xa5f   : > { %3162 = vmatprep.mubr.msk.f32.mxu1 %vm757_vm4, %v2410_v59 }
 0xa62   : > { %3163 = vmatmul.mubr.msk.f32.gmra.mrb[46].mxu1 %vm757_vm4, %v2412_v23 }
 0xa63   : > { %3165 = vmatprep.mubr.msk.f32.mxu1 %vm757_vm4, %v2414_v10 }
 0xa66   : > { %3166 = vmatmul.mubr.msk.f32.gmra.mrb[48].mxu1 %vm757_vm4, %v2416_v62 }
 0xa67   : > { %3168 = vmatprep.mubr.msk.f32.mxu1 %vm757_vm4, %v2418_v8 }
 0xa6a   : > { %3169 = vmatmul.mubr.msk.f32.gmra.mrb[50].mxu1 %vm757_vm4, %v2420_v39 }
 0xb31   : > { %v3161_v29 = vpop.f32.mrb[44].mxu1 }
 0xb32   : > { %v2517_v60 = vpop.f32.mrb[45].mxu1  ;;  %v2557_v41 = vmul.f32 %v3987_v48, %v3161_v29 }
 0xb33   : > { %v2556_v37 = vmul.f32 %v3999_v17, %v2517_v60 }
 0xb35   : > { %v3164_v42 = vpop.f32.mrb[46].mxu1 }
 0xb36   : > { %v2559_v30 = vmul.f32 %v3993_v57, %v3164_v42  ;;  %v2527_v19 = vpop.f32.mrb[47].mxu1 }
 0xb37   : > { %v2558_v3 = vmul.f32 %v4005_v15, %v2527_v19 }
 0xb38   : > { %v2565_v38 = vadd.f32 %v2559_v30, %v2557_v41 }
 0xb39   : > { %v2564_v46 = vadd.f32 %v2558_v3, %v2556_v37  ;;  %v3167_v24 = vpop.f32.mrb[48].mxu1 }
 0xb3a   : > { %v2561_v50 = vmul.f32 %v4011_v16, %v3167_v24  ;;  %v2537_v14 = vpop.f32.mrb[49].mxu1  ;;  %v2575_v16 = vpop.permute.xlu1 %2574 }
 0xb3b   : > { %v2560_v28 = vmul.f32 %v4017_v0, %v2537_v14  ;;  %v2596_v2 = vsel %vm460_vm2, %v995_v45, %v2575_v16 }
 0xb3c   : > { %v2567_v26 = vadd.f32 %v2565_v38, %v2561_v50 }
 0xb3d   : > { %v2566_v4 = vadd.f32 %v2564_v46, %v2560_v28  ;;  %v3170_v48 = vpop.f32.mrb[50].mxu1 }
 0xb3e   : > { %v2563_v57 = vmul.f32 %v4025_v5, %v3170_v48  ;;  %v2547_v33 = vpop.f32.mrb[51].mxu1  ;;  %v2577_v0 = vpop.permute.xlu1 %2576 }
 0xb3f   : > { %v2562_v17 = vmul.f32 %v4031_v35, %v2547_v33  ;;  %v2583_v5 = vpop.permute.xlu0 %2582  ;;  %v2597_v35 = vsel %vm460_vm2, %v996_v47, %v2577_v0 }
 0xb40   : > { %v2569_v27 = vadd.f32 %v2567_v26, %v2563_v57  ;;  %v2599_v22 = vsel %vm2598_vm5, %v2596_v2, %v2583_v5 }
 0xb41   : > { %v2568_v15 = vadd.f32 %v2566_v4, %v2562_v17 }
 0xb42   : > { %v2571_v9 = vmax.f32 %v2569_v27, 0.0  ;;  %v2585_v7 = vpop.permute.xlu1 %2584 }
 0xb43   : > { %v2570_v36 = vmax.f32 %v2568_v15, 0.0  ;;  %v2600_v53 = vsel %vm2598_vm5, %v2597_v35, %v2585_v7 }
 0xb44   : > { %2592 = vrot.lane.b32.xlu1 %v2571_v9, %s3423_s9 }
 0xb45   : > { %2590 = vrot.lane.b32.xlu0 %v2570_v36, %s3423_s9 }
 0xbb6   : > { %v2593_v34 = vpop.permute.xlu1 %2592 }
 0xbb7   : > { %v2603_v25 = vsel %vm2601_vm6, %v2600_v53, %v2593_v34  ;;  %v2591_v55 = vpop.permute.xlu0 %2590 }
 0xbb8   : > { %2605 = vst [vmem:[%s251_s7 + $0x8] sm:$0xff] %v2603_v25  ;;  %v2602_v20 = vsel %vm2601_vm6, %v2599_v22, %v2591_v55 }
 0xbb9   : > { %2604 = vst [vmem:[%s251_s7] sm:$0xff] %v2602_v20 }
 0xbba PF: > { %s15_s18 = sadd.s32 1, %s3420_s18  }
 0xbbb   : > { %p12_p6 = scmp.ge.s32.totalorder %s15_s18, 4  }
 0xbbd   :  { %14 = sbr.rel (!%p12_p6) target bundleno = 1 (0x1), region = 80 }

</bundles_post_ra>
